<compile_context>
chip_gen: v7x
topology: tpu7x:2x2x1
jax: 0.10.0
libtpu: 0.0.40
codegen_flags: <defaults>
</compile_context>

<pallas_src>
import functools

import jax
import jax.numpy as jnp
from jax import lax
from jax.experimental import pallas as pl
from jax.experimental.pallas import tpu as pltpu


def _shift_prev(a, valid_t):
    """out[:, t] = a[:, t-1], zero at t == 0 (lane-axis roll + edge mask)."""
    r = pltpu.roll(a, shift=1, axis=1)
    col = lax.broadcasted_iota(jnp.int32, a.shape, 1)
    return jnp.where(col == 0, jnp.zeros_like(r), r)


def _shift_next(a, valid_t):
    """out[:, t] = a[:, t+1], zero at t == valid_t - 1."""
    r = pltpu.roll(a, shift=a.shape[1] - 1, axis=1)   # roll by Tp-1 == shift -1
    col = lax.broadcasted_iota(jnp.int32, a.shape, 1)
    return jnp.where(col == valid_t - 1, jnp.zeros_like(r), r)


def x1d_kernel(x_ref, w1_ref, b1_ref, w2_ref, b2_ref, w3_ref, b3_ref,
               feat_ref, prob_ref, *, valid_t):
    f32 = jnp.float32
    bf16 = jnp.bfloat16

    x = x_ref[0]                                        # (Cin, Tp) f32

    # conv1 (k=3, pad=1): fused into one (C1, 3*Cin) @ (3*Cin, Tp) matmul.
    x_stack = jnp.concatenate(
        [_shift_prev(x, valid_t), x, _shift_next(x, valid_t)], axis=0)
    h1 = jnp.dot(w1_ref[...], x_stack.astype(bf16), preferred_element_type=f32)
    h1 = jnp.maximum(h1 + b1_ref[...], 0.0)             # (C1, Tp) f32

    # conv2 (k=3, pad=1): three accumulating MXU matmuls, K = 512 each.
    prev1 = _shift_prev(h1, valid_t).astype(bf16)
    cur1 = h1.astype(bf16)
    nxt1 = _shift_next(h1, valid_t).astype(bf16)
    h2 = (jnp.dot(w2_ref[0], prev1, preferred_element_type=f32)
          + jnp.dot(w2_ref[1], cur1, preferred_element_type=f32)
          + jnp.dot(w2_ref[2], nxt1, preferred_element_type=f32))
    h2 = jnp.maximum(h2 + b2_ref[...], 0.0)             # (C2, Tp) f32
    feat_ref[0] = h2.astype(feat_ref.dtype)

    # conv3 (k=1) head: (C3, C2) @ (C2, Tp), then sigmoid(0.01 * logits).
    logits = jnp.dot(w3_ref[...], h2.astype(bf16), preferred_element_type=f32)
    logits = logits + b3_ref[...]
    prob_ref[0] = jax.nn.sigmoid(0.01 * logits).astype(prob_ref.dtype)


def x1d_forward(x, params, rgb=True):
    """x: (B, feat_dim, T) float32 in PyTorch NCT layout."""
    w1, b1, w2, b2, w3, b3 = params
    feat_dim = x.shape[1]
    half = feat_dim // 2
    x = x[:, :half] if rgb else x[:, half:]             # (B, Cin, T), NCT
    B, Cin, T = x.shape
    C1, C2, C3 = w1.shape[2], w2.shape[2], w3.shape[1]

    # Lane-align the temporal axis (T pads to the same 128-lane tile in VMEM
    # anyway); inside the kernel everything is then unmasked / lane-dense.
    Tp = max(128, ((T + 127) // 128) * 128)
    if Tp != T:
        x = jnp.pad(x, ((0, 0), (0, 0), (0, Tp - T)))

    bf16 = jnp.bfloat16
    f32 = jnp.float32
    # Channels-major weights, prepared once outside the kernel:
    #   w1f[c1, k*Cin + cin] = w1[k, cin, c1]
    w1f = jnp.transpose(w1.reshape(3 * Cin, C1)).astype(bf16)   # (C1, 3*Cin)
    w2t = jnp.transpose(w2, (0, 2, 1)).astype(bf16)             # (3, C2, C1)
    w3t = jnp.transpose(w3).astype(bf16)                        # (C3, C2)
    b1c = b1.reshape(C1, 1).astype(f32)
    b2c = b2.reshape(C2, 1).astype(f32)
    b3c = b3.reshape(C3, 1).astype(f32)

    kernel = functools.partial(x1d_kernel, valid_t=T)

    feat, prob = pl.pallas_call(
        kernel,
        out_shape=(jax.ShapeDtypeStruct((B, C2, Tp), f32),
                   jax.ShapeDtypeStruct((B, C3, Tp), f32)),
        grid_spec=pltpu.PrefetchScalarGridSpec(
            num_scalar_prefetch=0,
            grid=(B,),
            in_specs=[
                pl.BlockSpec((1, Cin, Tp), lambda b: (b, 0, 0)),
                pl.BlockSpec((C1, 3 * Cin), lambda b: (0, 0)),
                pl.BlockSpec((C1, 1), lambda b: (0, 0)),
                pl.BlockSpec((3, C2, C1), lambda b: (0, 0, 0)),
                pl.BlockSpec((C2, 1), lambda b: (0, 0)),
                pl.BlockSpec((C3, C2), lambda b: (0, 0)),
                pl.BlockSpec((C3, 1), lambda b: (0, 0)),
            ],
            out_specs=[
                pl.BlockSpec((1, C2, Tp), lambda b: (b, 0, 0)),
                pl.BlockSpec((1, C3, Tp), lambda b: (b, 0, 0)),
            ],
        ),
        compiler_params=pltpu.CompilerParams(
            dimension_semantics=("parallel",),
            vmem_limit_bytes=32 * 1024 * 1024),
    )(x, w1f, b1c, w2t, b2c, w3t, b3c)

    feat = feat[:, :, :T]                                # (B, 128, T) NCT
    prob = prob[:, :, :T]                                # (B, 3, T)   NCT
    # torch.split(x4, 1, 1) -> (xb_start, xb_end, xc)
    return {
        'xc_feat': feat,
        'xc': prob[:, 2:3],
        'xb_start': prob[:, 0:1],
        'xb_end': prob[:, 1:2],
    }


def ref_forward(x, params, rgb=True):
    """Pure-JAX reference (lax.conv_general_dilated) for verification."""
    w1, b1, w2, b2, w3, b3 = params
    half = x.shape[1] // 2
    x = x[:, :half] if rgb else x[:, half:]

    def conv1d(inp, w_kio, b, pad):
        # w_kio: (K, Cin, Cout) -> torch OIH layout (Cout, Cin, K)
        w_oih = jnp.transpose(w_kio, (2, 1, 0))
        y = lax.conv_general_dilated(inp, w_oih, (1,), [(pad, pad)],
                                     dimension_numbers=('NCH', 'OIH', 'NCH'))
        return y + b.reshape(1, -1, 1)

    h1 = jax.nn.relu(conv1d(x, w1, b1, 1))
    h2 = jax.nn.relu(conv1d(h1, w2, b2, 1))
    w3_oih = jnp.transpose(w3, (1, 0))[:, :, None]       # (3, 128, 1)
    logits = lax.conv_general_dilated(h2, w3_oih, (1,), [(0, 0)],
                                      dimension_numbers=('NCH', 'OIH', 'NCH'))
    logits = logits + b3.reshape(1, -1, 1)
    probs = jax.nn.sigmoid(0.01 * logits)
    return h2, probs


if __name__ == "__main__":
    # Small shapes consistent with the module: feat_dim=8 (rgb half = 4
    # channels), temporal length 16, batch 2; hidden sizes 512/128/3.
    B, feat_dim, T = 2, 8, 16
    Cin = feat_dim // 2
    C1, C2, C3 = 512, 128, 3

    key = jax.random.PRNGKey(0)
    ks = jax.random.split(key, 7)
    x = jax.random.normal(ks[0], (B, feat_dim, T), jnp.float32)

    # Deterministic synthetic parameters (torch Conv1d weights stored here as
    # (K, Cin, Cout) / (1, Cout)).
    w1 = jax.random.normal(ks[1], (3, Cin, C1), jnp.float32) * 0.05
    b1 = jax.random.normal(ks[2], (1, C1), jnp.float32) * 0.01
    w2 = jax.random.normal(ks[3], (3, C1, C2), jnp.float32) * 0.05
    b2 = jax.random.normal(ks[4], (1, C2), jnp.float32) * 0.01
    w3 = jax.random.normal(ks[5], (C2, C3), jnp.float32) * 0.05
    b3 = jax.random.normal(ks[6], (1, C3), jnp.float32) * 0.01
    params = (w1, b1, w2, b2, w3, b3)

    out = x1d_forward(x, params, rgb=True)
    jax.block_until_ready(out)

    # Verify against the pure-JAX conv reference (f32); kernel matmuls run in
    # bf16 with f32 accumulation, so tolerances are relaxed accordingly.
    h2_ref, probs_ref = ref_forward(x, params, rgb=True)
    assert out['xc_feat'].shape == (B, C2, T)
    assert out['xc'].shape == (B, 1, T)
    assert jnp.allclose(out['xc_feat'], h2_ref, atol=5e-2, rtol=5e-2)
    assert jnp.allclose(out['xb_start'], probs_ref[:, 0:1], atol=1e-3)
    assert jnp.allclose(out['xb_end'], probs_ref[:, 1:2], atol=1e-3)
    assert jnp.allclose(out['xc'], probs_ref[:, 2:3], atol=1e-3)

    print("KERNEL_OK")
</pallas_src>

<mosaic_0001>
module attributes {stable_mosaic.version = 11 : i64} {
  func.func @x1d_kernel(%arg0: i32, %arg1: memref<1x4x128xf32, #tpu.memory_space<vmem>>, %arg2: memref<512x12xbf16, #tpu.memory_space<vmem>>, %arg3: memref<512x1xf32, #tpu.memory_space<vmem>>, %arg4: memref<3x128x512xbf16, #tpu.memory_space<vmem>>, %arg5: memref<128x1xf32, #tpu.memory_space<vmem>>, %arg6: memref<3x128xbf16, #tpu.memory_space<vmem>>, %arg7: memref<3x1xf32, #tpu.memory_space<vmem>>, %arg8: memref<1x128x128xf32, #tpu.memory_space<vmem>>, %arg9: memref<1x3x128xf32, #tpu.memory_space<vmem>>) attributes {dimension_semantics = [#tpu.dimension_semantics<parallel>], iteration_bounds = array<i64: 2>, scalar_prefetch = 0 : i64, scratch_operands = 0 : i64, tpu.core_type = #tpu.core_type<tc>, window_params = [{transform_indices = @transform_0, window_bounds = array<i64: 1, 4, 128>}, {pipeline_mode = #tpu.pipeline_mode<synchronous>, transform_indices = @transform_1, window_bounds = array<i64: 512, 12>}, {pipeline_mode = #tpu.pipeline_mode<synchronous>, transform_indices = @transform_2, window_bounds = array<i64: 512, 1>}, {pipeline_mode = #tpu.pipeline_mode<synchronous>, transform_indices = @transform_3, window_bounds = array<i64: 3, 128, 512>}, {pipeline_mode = #tpu.pipeline_mode<synchronous>, transform_indices = @transform_4, window_bounds = array<i64: 128, 1>}, {pipeline_mode = #tpu.pipeline_mode<synchronous>, transform_indices = @transform_5, window_bounds = array<i64: 3, 128>}, {pipeline_mode = #tpu.pipeline_mode<synchronous>, transform_indices = @transform_6, window_bounds = array<i64: 3, 1>}, {transform_indices = @transform_7, window_bounds = array<i64: 1, 128, 128>}, {transform_indices = @transform_8, window_bounds = array<i64: 1, 3, 128>}]} {
    %c0 = arith.constant 0 : index
    %c0_0 = arith.constant 0 : index
    %c0_1 = arith.constant 0 : index
    %0 = vector.load %arg1[%c0, %c0_0, %c0_1] : memref<1x4x128xf32, #tpu.memory_space<vmem>>, vector<1x4x128xf32>
    %1 = vector.shape_cast %0 : vector<1x4x128xf32> to vector<4x128xf32>
    %c1_i32 = arith.constant 1 : i32
    %2 = tpu.dynamic_rotate %1 by %c1_i32 dim 1 : vector<4x128xf32>, i32 -> vector<4x128xf32>
    %3 = tpu.iota {dimensions = array<i32: 1>} : vector<4x128xi32>
    %c0_i32 = arith.constant 0 : i32
    %4 = vector.broadcast %c0_i32 : i32 to vector<4x128xi32>
    %5 = arith.cmpi eq, %3, %4 : vector<4x128xi32>
    %cst = arith.constant 0.000000e+00 : f32
    %6 = vector.broadcast %cst : f32 to vector<4x128xf32>
    %7 = arith.select %5, %6, %2 : vector<4x128xi1>, vector<4x128xf32>
    %c127_i32 = arith.constant 127 : i32
    %8 = tpu.dynamic_rotate %1 by %c127_i32 dim 1 : vector<4x128xf32>, i32 -> vector<4x128xf32>
    %9 = tpu.iota {dimensions = array<i32: 1>} : vector<4x128xi32>
    %c15_i32 = arith.constant 15 : i32
    %10 = vector.broadcast %c15_i32 : i32 to vector<4x128xi32>
    %11 = arith.cmpi eq, %9, %10 : vector<4x128xi32>
    %cst_2 = arith.constant 0.000000e+00 : f32
    %12 = vector.broadcast %cst_2 : f32 to vector<4x128xf32>
    %13 = arith.select %11, %12, %8 : vector<4x128xi1>, vector<4x128xf32>
    %14 = tpu.concatenate %7, %1, %13 in 0 : vector<4x128xf32>, vector<4x128xf32>, vector<4x128xf32> -> vector<12x128xf32>
    %c0_3 = arith.constant 0 : index
    %c0_4 = arith.constant 0 : index
    %15 = vector.load %arg2[%c0_3, %c0_4] : memref<512x12xbf16, #tpu.memory_space<vmem>>, vector<512x12xbf16>
    %16 = arith.truncf %14 : vector<12x128xf32> to vector<12x128xbf16>
    %cst_5 = arith.constant dense<0.000000e+00> : vector<512x128xf32>
    %17 = tpu.matmul %15, %16, %cst_5 {dimension_numbers = #tpu.dot_dimension_numbers<[1], [0], [0], [1], [0, 0, 1, 1], [], []>} : vector<512x12xbf16>, vector<12x128xbf16>, vector<512x128xf32> -> vector<512x128xf32>
    %c0_6 = arith.constant 0 : index
    %c0_7 = arith.constant 0 : index
    %18 = vector.load %arg3[%c0_6, %c0_7] : memref<512x1xf32, #tpu.memory_space<vmem>>, vector<512x1xf32>
    %19 = vector.broadcast %18 : vector<512x1xf32> to vector<512x128xf32>
    %20 = arith.addf %17, %19 : vector<512x128xf32>
    %cst_8 = arith.constant 0.000000e+00 : f32
    %21 = vector.broadcast %cst_8 : f32 to vector<512x128xf32>
    %22 = arith.maximumf %20, %21 : vector<512x128xf32>
    %c1_i32_9 = arith.constant 1 : i32
    %23 = tpu.dynamic_rotate %22 by %c1_i32_9 dim 1 : vector<512x128xf32>, i32 -> vector<512x128xf32>
    %24 = tpu.iota {dimensions = array<i32: 1>} : vector<512x128xi32>
    %c0_i32_10 = arith.constant 0 : i32
    %25 = vector.broadcast %c0_i32_10 : i32 to vector<512x128xi32>
    %26 = arith.cmpi eq, %24, %25 : vector<512x128xi32>
    %cst_11 = arith.constant 0.000000e+00 : f32
    %27 = vector.broadcast %cst_11 : f32 to vector<512x128xf32>
    %28 = arith.select %26, %27, %23 : vector<512x128xi1>, vector<512x128xf32>
    %29 = arith.truncf %28 : vector<512x128xf32> to vector<512x128xbf16>
    %30 = arith.truncf %22 : vector<512x128xf32> to vector<512x128xbf16>
    %c127_i32_12 = arith.constant 127 : i32
    %31 = tpu.dynamic_rotate %22 by %c127_i32_12 dim 1 : vector<512x128xf32>, i32 -> vector<512x128xf32>
    %32 = tpu.iota {dimensions = array<i32: 1>} : vector<512x128xi32>
    %c15_i32_13 = arith.constant 15 : i32
    %33 = vector.broadcast %c15_i32_13 : i32 to vector<512x128xi32>
    %34 = arith.cmpi eq, %32, %33 : vector<512x128xi32>
    %cst_14 = arith.constant 0.000000e+00 : f32
    %35 = vector.broadcast %cst_14 : f32 to vector<512x128xf32>
    %36 = arith.select %34, %35, %31 : vector<512x128xi1>, vector<512x128xf32>
    %37 = arith.truncf %36 : vector<512x128xf32> to vector<512x128xbf16>
    %c0_15 = arith.constant 0 : index
    %c0_16 = arith.constant 0 : index
    %c0_17 = arith.constant 0 : index
    %38 = vector.load %arg4[%c0_15, %c0_16, %c0_17] : memref<3x128x512xbf16, #tpu.memory_space<vmem>>, vector<1x128x512xbf16>
    %39 = vector.shape_cast %38 : vector<1x128x512xbf16> to vector<128x512xbf16>
    %cst_18 = arith.constant dense<0.000000e+00> : vector<128x128xf32>
    %40 = tpu.matmul %39, %29, %cst_18 {dimension_numbers = #tpu.dot_dimension_numbers<[1], [0], [0], [1], [0, 0, 1, 1], [], []>} : vector<128x512xbf16>, vector<512x128xbf16>, vector<128x128xf32> -> vector<128x128xf32>
    %c1 = arith.constant 1 : index
    %c0_19 = arith.constant 0 : index
    %c0_20 = arith.constant 0 : index
    %41 = vector.load %arg4[%c1, %c0_19, %c0_20] : memref<3x128x512xbf16, #tpu.memory_space<vmem>>, vector<1x128x512xbf16>
    %42 = vector.shape_cast %41 : vector<1x128x512xbf16> to vector<128x512xbf16>
    %cst_21 = arith.constant dense<0.000000e+00> : vector<128x128xf32>
    %43 = tpu.matmul %42, %30, %cst_21 {dimension_numbers = #tpu.dot_dimension_numbers<[1], [0], [0], [1], [0, 0, 1, 1], [], []>} : vector<128x512xbf16>, vector<512x128xbf16>, vector<128x128xf32> -> vector<128x128xf32>
    %44 = arith.addf %40, %43 : vector<128x128xf32>
    %c2 = arith.constant 2 : index
    %c0_22 = arith.constant 0 : index
    %c0_23 = arith.constant 0 : index
    %45 = vector.load %arg4[%c2, %c0_22, %c0_23] : memref<3x128x512xbf16, #tpu.memory_space<vmem>>, vector<1x128x512xbf16>
    %46 = vector.shape_cast %45 : vector<1x128x512xbf16> to vector<128x512xbf16>
    %cst_24 = arith.constant dense<0.000000e+00> : vector<128x128xf32>
    %47 = tpu.matmul %46, %37, %cst_24 {dimension_numbers = #tpu.dot_dimension_numbers<[1], [0], [0], [1], [0, 0, 1, 1], [], []>} : vector<128x512xbf16>, vector<512x128xbf16>, vector<128x128xf32> -> vector<128x128xf32>
    %48 = arith.addf %44, %47 : vector<128x128xf32>
    %c0_25 = arith.constant 0 : index
    %c0_26 = arith.constant 0 : index
    %49 = vector.load %arg5[%c0_25, %c0_26] : memref<128x1xf32, #tpu.memory_space<vmem>>, vector<128x1xf32>
    %50 = vector.broadcast %49 : vector<128x1xf32> to vector<128x128xf32>
    %51 = arith.addf %48, %50 : vector<128x128xf32>
    %cst_27 = arith.constant 0.000000e+00 : f32
    %52 = vector.broadcast %cst_27 : f32 to vector<128x128xf32>
    %53 = arith.maximumf %51, %52 : vector<128x128xf32>
    %c0_28 = arith.constant 0 : index
    %c0_29 = arith.constant 0 : index
    %c0_30 = arith.constant 0 : index
    %54 = vector.load %arg8[%c0_28, %c0_29, %c0_30] : memref<1x128x128xf32, #tpu.memory_space<vmem>>, vector<1x128x128xf32>
    %55 = vector.shape_cast %54 : vector<1x128x128xf32> to vector<128x128xf32>
    %56 = vector.shape_cast %53 : vector<128x128xf32> to vector<1x128x128xf32>
    tpu.vector_store %arg8[%c0_28, %c0_29, %c0_30], %56 {strides = array<i32>} : memref<1x128x128xf32, #tpu.memory_space<vmem>>, vector<1x128x128xf32>,
    %c0_31 = arith.constant 0 : index
    %c0_32 = arith.constant 0 : index
    %57 = vector.load %arg6[%c0_31, %c0_32] : memref<3x128xbf16, #tpu.memory_space<vmem>>, vector<3x128xbf16>
    %58 = arith.truncf %53 : vector<128x128xf32> to vector<128x128xbf16>
    %cst_33 = arith.constant dense<0.000000e+00> : vector<3x128xf32>
    %59 = tpu.matmul %57, %58, %cst_33 {dimension_numbers = #tpu.dot_dimension_numbers<[1], [0], [0], [1], [0, 0, 1, 1], [], []>} : vector<3x128xbf16>, vector<128x128xbf16>, vector<3x128xf32> -> vector<3x128xf32>
    %c0_34 = arith.constant 0 : index
    %c0_35 = arith.constant 0 : index
    %60 = vector.load %arg7[%c0_34, %c0_35] : memref<3x1xf32, #tpu.memory_space<vmem>>, vector<3x1xf32>
    %61 = vector.broadcast %60 : vector<3x1xf32> to vector<3x128xf32>
    %62 = arith.addf %59, %61 : vector<3x128xf32>
    %cst_36 = arith.constant 0.00999999977 : f32
    %63 = vector.broadcast %cst_36 : f32 to vector<3x128xf32>
    %64 = arith.mulf %63, %62 : vector<3x128xf32>
    %65 = arith.negf %64 : vector<3x128xf32>
    %66 = math.exp %65 : vector<3x128xf32>
    %cst_37 = arith.constant 1.000000e+00 : f32
    %67 = vector.broadcast %cst_37 : f32 to vector<3x128xf32>
    %68 = arith.addf %67, %66 : vector<3x128xf32>
    %69 = arith.divf %67, %68 : vector<3x128xf32>
    %c0_38 = arith.constant 0 : index
    %c0_39 = arith.constant 0 : index
    %c0_40 = arith.constant 0 : index
    %70 = vector.load %arg9[%c0_38, %c0_39, %c0_40] : memref<1x3x128xf32, #tpu.memory_space<vmem>>, vector<1x3x128xf32>
    %71 = vector.shape_cast %70 : vector<1x3x128xf32> to vector<3x128xf32>
    %72 = vector.shape_cast %69 : vector<3x128xf32> to vector<1x3x128xf32>
    tpu.vector_store %arg9[%c0_38, %c0_39, %c0_40], %72 {strides = array<i32>} : memref<1x3x128xf32, #tpu.memory_space<vmem>>, vector<1x3x128xf32>,
    return
  }
  func.func @transform_0(%arg0: i32) -> (i32, i32, i32) {
    %c0_i32 = arith.constant 0 : i32
    %c0_i32_0 = arith.constant 0 : i32
    %c0_i32_1 = arith.constant 0 : i32
    return %arg0, %c0_i32, %c0_i32_0 : i32, i32, i32
  }
  func.func @transform_1(%arg0: i32) -> (i32, i32) {
    %c0_i32 = arith.constant 0 : i32
    %c0_i32_0 = arith.constant 0 : i32
    %c0_i32_1 = arith.constant 0 : i32
    return %c0_i32, %c0_i32_0 : i32, i32
  }
  func.func @transform_2(%arg0: i32) -> (i32, i32) {
    %c0_i32 = arith.constant 0 : i32
    %c0_i32_0 = arith.constant 0 : i32
    %c0_i32_1 = arith.constant 0 : i32
    return %c0_i32, %c0_i32_0 : i32, i32
  }
  func.func @transform_3(%arg0: i32) -> (i32, i32, i32) {
    %c0_i32 = arith.constant 0 : i32
    %c0_i32_0 = arith.constant 0 : i32
    %c0_i32_1 = arith.constant 0 : i32
    %c0_i32_2 = arith.constant 0 : i32
    return %c0_i32, %c0_i32_0, %c0_i32_1 : i32, i32, i32
  }
  func.func @transform_4(%arg0: i32) -> (i32, i32) {
    %c0_i32 = arith.constant 0 : i32
    %c0_i32_0 = arith.constant 0 : i32
    %c0_i32_1 = arith.constant 0 : i32
    return %c0_i32, %c0_i32_0 : i32, i32
  }
  func.func @transform_5(%arg0: i32) -> (i32, i32) {
    %c0_i32 = arith.constant 0 : i32
    %c0_i32_0 = arith.constant 0 : i32
    %c0_i32_1 = arith.constant 0 : i32
    return %c0_i32, %c0_i32_0 : i32, i32
  }
  func.func @transform_6(%arg0: i32) -> (i32, i32) {
    %c0_i32 = arith.constant 0 : i32
    %c0_i32_0 = arith.constant 0 : i32
    %c0_i32_1 = arith.constant 0 : i32
    return %c0_i32, %c0_i32_0 : i32, i32
  }
  func.func @transform_7(%arg0: i32) -> (i32, i32, i32) {
    %c0_i32 = arith.constant 0 : i32
    %c0_i32_0 = arith.constant 0 : i32
    %c0_i32_1 = arith.constant 0 : i32
    return %arg0, %c0_i32, %c0_i32_0 : i32, i32, i32
  }
  func.func @transform_8(%arg0: i32) -> (i32, i32, i32) {
    %c0_i32 = arith.constant 0 : i32
    %c0_i32_0 = arith.constant 0 : i32
    %c0_i32_1 = arith.constant 0 : i32
    return %arg0, %c0_i32, %c0_i32_0 : i32, i32, i32
  }
}

</mosaic_0001>

<bundles_post_ra>
// kernel: tpu_custom_call.1
= control target key start
LH: loop header
LB: loop body
LE: loop exit
PB: predicated region body
PF: predicated region fallthrough
CT: control target
= control target key end

     0   :  { %14 = vsyncpa [#allocation3], 0  ;;  %s6729_s0 = inlined_call_operand.vmem [shape: f32[2,4,128], index: 0, kind: input, shape index: {}]   ;;  %s6730_s1 = inlined_call_operand.vmem [shape: bf16[512,12], index: 1, kind: input, shape index: {}]   ;;  %s6731_s2 = inlined_call_operand.vmem [shape: f32[512,1], index: 2, kind: input, shape index: {}]   ;;  %s6732_s3 = inlined_call_operand.vmem [shape: bf16[3,128,512], index: 3, kind: input, shape index: {}]   ;;  %s6733_s4 = inlined_call_operand.vmem [shape: f32[128,1], index: 4, kind: input, shape index: {}]   ;;  %s6734_s5 = inlined_call_operand.vmem [shape: bf16[3,128], index: 5, kind: input, shape index: {}]   ;;  %s6735_s6 = inlined_call_operand.vmem [shape: f32[3,1], index: 6, kind: input, shape index: {}]   ;;  %s6736_s7 = inlined_call_operand.hbm [shape: f32[2,128,128], index: 7, kind: output, shape index: {0}]   ;;  %s6737_s8 = inlined_call_operand.vmem [shape: f32[2,3,128], index: 8, kind: output, shape index: {1}]  }
   0x1   :  { %16 = vsyncpa [#allocation3 + $0x1], 0  ;;  %s5098_s27 = smov 0   ;;  %s5100_s28 = smov 0  }
   0x2   :  { %s5102_s29 = smov 0   ;;  %s5104_s30 = smov 0  }
   0x3 LB: > { %s5119_s9 = sadd.s32 4294967295, %s5043_s30   ;;  %s3362_s10 = sadd.s32 4294967294, %s5043_s30   ;;  %s5043_s30 = sphi %s5104_s30, %s6749_s30   ;;  %s5039_s29 = sphi %s5102_s29, %s6748_s29   ;;  %s5035_s28 = sphi %s5100_s28, %s6747_s28   ;;  %s5031_s27 = sphi %s5098_s27, %s6746_s27  }
   0x4   : > { %s5123_s11 = sadd.s32 1, %s5043_s30   ;;  %s181_s12 = sadd.s32 1, %s5039_s29 }
   0x5   : > { %s178_s13 = ssub.s32 %s5043_s30, %s5123_s11  ;;  %p191_p0 = scmp.ne.s32.totalorder %s5039_s29, %s5035_s28 }
   0x6   : > { %p179_p1 = scmp.eq.s32.totalorder %s178_s13, 0  ;;  %p192_p2 = scmp.eq.s32.totalorder %s5119_s9, 1 }
   0x7   : > { %p197_p3 = scmp.ne.s32.totalorder %s5035_s28, %s5031_s27  ;;  %p198_p4 = scmp.eq.s32.totalorder %s3362_s10, 1 }
   0x8   : > { %s5134_s14 = scalar_select %p179_p1, %s5039_s29, %s181_s12  }
   0x9   : > { %p5136_p5 = por %p192_p2, %p191_p0  ;;  %p5140_p6 = por %p198_p4, %p197_p3 }
   0xa   : > { %p3365_p7 = scmp.ge.s32.totalorder %s5043_s30, 1  ;;  %p267_p8 = scmp.lt.s32.totalorder %s5043_s30, 3 }
   0xc   : > { %p268_p9 = pnand %p3365_p7, %p267_p8 }
   0xd   : > { %p304_p10 = scmp.lt.s32.totalorder (!%p268_p9), %s5119_s9, 1  ;;  %v410_v0 = vld [vmem:[%s6731_s2 + $0x80] sm:$0xff] (!%p268_p9)  ;;  %v5045_v1 = vmov (!%p268_p9), 0   ;;  %v411_v2 = vld [vmem:[%s6731_s2 + $0x88] sm:$0xff] (!%p268_p9)  ;;  %s5046_s26 = smov (!%p268_p9), 1   ;;  %v412_v5 = vld [vmem:[%s6731_s2 + $0x90] sm:$0xff] (!%p268_p9)  ;;  %v316_v57 = vlaneseq (!%p268_p9) }
   0xe   : > { %271 = sbr.rel (%p268_p9) target bundleno = 1219 (0x4c3), region = 48  ;;  %4479 = vset.pattern.permute.xlu1 (!%p268_p9), %v5045_v1  ;;  %4480 = vset.pattern.permute.xlu0 (!%p268_p9), %v5045_v1  ;;  %v395_v4 = vld [vmem:[%s6731_s2 + $0x8] sm:$0xff] (!%p268_p9)  ;;  %s5047_s13 = smov (!%p268_p9), 127   ;;  %v394_v6 = vld [vmem:[%s6731_s2] sm:$0xff] (!%p268_p9)  ;;  %vm938_vm0 = vcmask (!%p268_p9), 97280   ;;  %v396_v8 = vld [vmem:[%s6731_s2 + $0x10] sm:$0xff] (!%p268_p9) }
   0xf   : > { %540 = vperm.xlu1 (!%p268_p9), %4479, %v410_v0   ;;  %v4801_v7 = vld [vmem:[%s6730_s1] sm:$0xff] (!%p268_p9)   ;;  %v413_v9 = vld [vmem:[%s6731_s2 + $0x98] sm:$0xff] (!%p268_p9)  ;;  %v415_v13 = vld [vmem:[%s6731_s2 + $0xa8] sm:$0xff] (!%p268_p9)  ;;  %v5334_v60 = vand.u32 (!%p268_p9), 127, %v316_v57  ;;  %vm327_vm3 = vcmask (!%p268_p9), 1043456   ;;  %vm1035_vm4 = vcmask (!%p268_p9), 1045504  }
  0x10   : > { %4348 = vmatprep.mubr.msk.bf16.mxu0 (!%p268_p9), %vm938_vm0, %v4801_v7  ;;  %v414_v10 = vld [vmem:[%s6731_s2 + $0xa0] sm:$0xff] (!%p268_p9)  ;;  %v397_v11 = vld [vmem:[%s6731_s2 + $0x18] sm:$0xff] (!%p268_p9)  ;;  %v416_v14 = vld [vmem:[%s6731_s2 + $0xb0] sm:$0xff] (!%p268_p9)  ;;  %vm5049_vm9 = vmmov (!%p268_p9), 0   ;;  %s295_s24 = sand.u32 (!%p268_p9), 1, %s5035_s28   ;;  %s3919_s17 = sshll.u32 (!%p268_p9), %s5119_s9, 11 }
  0x11   : > { %v398_v12 = vld [vmem:[%s6731_s2 + $0x20] sm:$0xff] (!%p268_p9)  ;;  %v399_v15 = vld [vmem:[%s6731_s2 + $0x28] sm:$0xff] (!%p268_p9)  ;;  %v400_v16 = vld [vmem:[%s6731_s2 + $0x30] sm:$0xff] (!%p268_p9)  ;;  %vm318_vm1 = vcmp.eq.s32.totalorder (!%p268_p9), %v5334_v60, 0  ;;  %vm322_vm2 = vcmp.eq.s32.totalorder (!%p268_p9), %v5334_v60, 15  ;;  %s6677_s21 = scalar_lea.hbm (!%p268_p9), %s6736_s7, %s3919_s17  ;;  %s6683_s23 = scalar_lea.sflag (!%p268_p9), [#allocation3], %s295_s24 }
  0x12   : > { %v417_v17 = vld [vmem:[%s6731_s2 + $0xb8] sm:$0xff] (!%p268_p9)  ;;  %v418_v18 = vld [vmem:[%s6731_s2 + $0xc0] sm:$0xff] (!%p268_p9)  ;;  %v419_v21 = vld [vmem:[%s6731_s2 + $0xc8] sm:$0xff] (!%p268_p9) }
  0x13   : > { %545 = vperm.xlu1 (!%p268_p9), %4479, %v411_v2   ;;  %v401_v19 = vld [vmem:[%s6731_s2 + $0x38] sm:$0xff] (!%p268_p9)  ;;  %v402_v20 = vld [vmem:[%s6731_s2 + $0x40] sm:$0xff] (!%p268_p9)  ;;  %v420_v22 = vld [vmem:[%s6731_s2 + $0xd0] sm:$0xff] (!%p268_p9) }
  0x14   : > { %v403_v23 = vld [vmem:[%s6731_s2 + $0x48] sm:$0xff] (!%p268_p9)  ;;  %v404_v24 = vld [vmem:[%s6731_s2 + $0x50] sm:$0xff] (!%p268_p9)  ;;  %v421_v25 = vld [vmem:[%s6731_s2 + $0xd8] sm:$0xff] (!%p268_p9) }
  0x15   : > { %s5151_s19 = scalar_select %p304_p10, %s5119_s9, 1  ;;  %v422_v26 = vld [vmem:[%s6731_s2 + $0xe0] sm:$0xff]  ;;  %v405_v27 = vld [vmem:[%s6731_s2 + $0x58] sm:$0xff]  ;;  %v423_v29 = vld [vmem:[%s6731_s2 + $0xe8] sm:$0xff] }
  0x16   : > { %v406_v28 = vld [vmem:[%s6731_s2 + $0x60] sm:$0xff]  ;;  %v424_v30 = vld [vmem:[%s6731_s2 + $0xf0] sm:$0xff]  ;;  %v407_v31 = vld [vmem:[%s6731_s2 + $0x68] sm:$0xff]  ;;  %s5050_s9 = smov [#allocation2]  }
  0x17   : > { %s6738_s22 = sshll.u32 %s5151_s19, 2  ;;  %465 = vperm.xlu1 %4479, %v395_v4   ;;  %v408_v32 = vld [vmem:[%s6731_s2 + $0x70] sm:$0xff]  ;;  %v425_v33 = vld [vmem:[%s6731_s2 + $0xf8] sm:$0xff]  ;;  %v442_v34 = vld [vmem:[%s6731_s2 + $0x180] sm:$0xff] }
  0x18   : > { %s307_s25 = scalar_lea.vmem %s6729_s0, %s6738_s22  ;;  %v409_v35 = vld [vmem:[%s6731_s2 + $0x78] sm:$0xff]  ;;  %v426_v36 = vld [vmem:[%s6731_s2 + $0x100] sm:$0xff]  ;;  %v443_v37 = vld [vmem:[%s6731_s2 + $0x188] sm:$0xff] }
  0x19   : > { %v5162_v3 = vld [vmem:[%s307_s25] sm:$0xf]  ;;  %v444_v38 = vld [vmem:[%s6731_s2 + $0x190] sm:$0xff]  ;;  %v427_v39 = vld [vmem:[%s6731_s2 + $0x108] sm:$0xff]  ;;  %s3366_s25 = sshll.u32 %s295_s24, 7 }
  0x1a   : > { %314 = vrot.lane.b32.xlu0 %v5162_v3, %s5046_s26  ;;  %v428_v40 = vld [vmem:[%s6731_s2 + $0x110] sm:$0xff]  ;;  %v445_v41 = vld [vmem:[%s6731_s2 + $0x198] sm:$0xff]  ;;  %v446_v42 = vld [vmem:[%s6731_s2 + $0x1a0] sm:$0xff]  ;;  %v325_v1 = vrot.slane %v5162_v3, 4  ;;  %s6616_s10 = scalar_lea.vmem [#allocation2], %s3366_s25  ;;  %s4985_s25 = sshll.u32 %s5050_s9, 4  ;;  %s4986_s25 = int_to_ptr.vmem [resolvable:$false] %s4985_s25 }
  0x1b   : > { %550 = vperm.xlu1 %4479, %v412_v5   ;;  %v429_v43 = vld [vmem:[%s6731_s2 + $0x118] sm:$0xff]  ;;  %v430_v44 = vld [vmem:[%s6731_s2 + $0x120] sm:$0xff]  ;;  %v447_v45 = vld [vmem:[%s6731_s2 + $0x1a8] sm:$0xff]  ;;  %s3273_s18 = sshll.u32 %s6616_s10, 4  ;;  %s6679_s18 = int_to_ptr.vmem [resolvable:$true] %s3273_s18 }
  0x1c   : > { %v448_v46 = vld [vmem:[%s6731_s2 + $0x1b0] sm:$0xff]  ;;  %v431_v47 = vld [vmem:[%s6731_s2 + $0x128] sm:$0xff]  ;;  %v449_v49 = vld [vmem:[%s6731_s2 + $0x1b8] sm:$0xff]  ;;  %s4981_s22 = scalar_lea.vmem %s6679_s18, 2048  ;;  %p4988_p0 = scmp.lt.s32.totalorder %s6679_s18, %s4986_s25 }
  0x1d   : > { %v432_v48 = vld [vmem:[%s6731_s2 + $0x130] sm:$0xff]  ;;  %v450_v50 = vld [vmem:[%s6731_s2 + $0x1c0] sm:$0xff]  ;;  %v433_v51 = vld [vmem:[%s6731_s2 + $0x138] sm:$0xff]  ;;  %p4982_p11 = scmp.ne.s32.totalorder %s6679_s18, %s4981_s22 }
  0x1e   : > { %320 = vrot.lane.b32.xlu0 %v5162_v3, %s5047_s13  ;;  %v434_v52 = vld [vmem:[%s6731_s2 + $0x140] sm:$0xff]  ;;  %v451_v53 = vld [vmem:[%s6731_s2 + $0x1c8] sm:$0xff]  ;;  %v452_v54 = vld [vmem:[%s6731_s2 + $0x1d0] sm:$0xff] }
  0x1f   : > { %470 = vperm.xlu1 %4479, %v396_v8   ;;  %v435_v55 = vld [vmem:[%s6731_s2 + $0x148] sm:$0xff]  ;;  %v436_v56 = vld [vmem:[%s6731_s2 + $0x150] sm:$0xff]  ;;  %v453_v58 = vld [vmem:[%s6731_s2 + $0x1d8] sm:$0xff]  ;;  %p4983_p12 = pnand %p4982_p11, %p5136_p5 }
  0x20   : > { %v454_v59 = vld [vmem:[%s6731_s2 + $0x1e0] sm:$0xff]  ;;  %v437_v61 = vld [vmem:[%s6731_s2 + $0x158] sm:$0xff]  ;;  %v455_v63 = vld [vmem:[%s6731_s2 + $0x1e8] sm:$0xff] }
  0x21   : > { %v438_v62 = vld [vmem:[%s6731_s2 + $0x160] sm:$0xff]  ;;  %v456_v4 = vld [vmem:[%s6731_s2 + $0x1f0] sm:$0xff]  ;;  %v439_v5 = vld [vmem:[%s6731_s2 + $0x168] sm:$0xff]  ;;  %p4984_p13 = pneg %p4983_p12 }
  0x22   : > { %460 = vperm.xlu0 %4480, %v394_v6   ;;  %vm3529_vm5 = vmneg %vm318_vm1  ;;  %v4943_v60 = vld [vmem:[%s6732_s3 + $0x24c] ss:$16 sps:$4 sm:$0xff]  }
  0x23   : > { %560 = vperm.xlu1 %4479, %v414_v10   ;;  %v457_v10 = vld [vmem:[%s6731_s2 + $0x1f8] sm:$0xff]  ;;  %vm5957_vm6 = vmpackc.low %vm3529_vm5, %vm3529_vm5 }
  0x24   : > { %vm3753_vm7 = vmneg %vm322_vm2 }
  0x25   : > { %vm6069_vm8 = vmpackc.low %vm3753_vm7, %vm3753_vm7 }
  0x26   : > { %555 = vperm.xlu0 %4480, %v413_v9   ;;  %v440_v9 = vld [vmem:[%s6731_s2 + $0x170] sm:$0xff] }
  0x27   : > { %480 = vperm.xlu1 %4479, %v398_v12   ;;  %v4802_v12 = vld [vmem:[%s6730_s1 + $0x8] sm:$0xff]  }
  0x2a   : > { %475 = vperm.xlu0 %4480, %v397_v11  }
  0x2b   : > { %570 = vperm.xlu1 %4479, %v416_v14   ;;  %v441_v14 = vld [vmem:[%s6731_s2 + $0x178] sm:$0xff] }
  0x2e   : > { %565 = vperm.xlu0 %4480, %v415_v13   ;;  %v4803_v13 = vld [vmem:[%s6730_s1 + $0x10] sm:$0xff]  }
  0x2f   : > { %490 = vperm.xlu1 %4479, %v400_v16   ;;  %v4805_v16 = vld [vmem:[%s6730_s1 + $0x20] sm:$0xff]  }
  0x32   : > { %485 = vperm.xlu0 %4480, %v399_v15   ;;  %v4804_v15 = vld [vmem:[%s6730_s1 + $0x18] sm:$0xff]  }
  0x33   : > { %580 = vperm.xlu1 %4479, %v418_v18   ;;  %v4807_v18 = vld [vmem:[%s6730_s1 + $0x30] sm:$0xff]  }
  0x36   : > { %575 = vperm.xlu0 %4480, %v417_v17   ;;  %v4806_v17 = vld [vmem:[%s6730_s1 + $0x28] sm:$0xff]  }
  0x37   : > { %500 = vperm.xlu1 %4479, %v402_v20   ;;  %v4809_v20 = vld [vmem:[%s6730_s1 + $0x40] sm:$0xff]  }
  0x3a   : > { %495 = vperm.xlu0 %4480, %v401_v19   ;;  %v4808_v19 = vld [vmem:[%s6730_s1 + $0x38] sm:$0xff]  }
  0x3b   : > { %590 = vperm.xlu1 %4479, %v420_v22   ;;  %v4811_v22 = vld [vmem:[%s6730_s1 + $0x50] sm:$0xff]  }
  0x3e   : > { %585 = vperm.xlu0 %4480, %v419_v21   ;;  %v4810_v21 = vld [vmem:[%s6730_s1 + $0x48] sm:$0xff]  }
  0x3f   : > { %510 = vperm.xlu1 %4479, %v404_v24   ;;  %v4813_v24 = vld [vmem:[%s6730_s1 + $0x60] sm:$0xff]  }
  0x42   : > { %505 = vperm.xlu0 %4480, %v403_v23   ;;  %v4812_v23 = vld [vmem:[%s6730_s1 + $0x58] sm:$0xff]  }
  0x43   : > { %600 = vperm.xlu1 %4479, %v422_v26   ;;  %v4815_v26 = vld [vmem:[%s6730_s1 + $0x70] sm:$0xff]  }
  0x46   : > { %595 = vperm.xlu0 %4480, %v421_v25   ;;  %v4814_v25 = vld [vmem:[%s6730_s1 + $0x68] sm:$0xff]  }
  0x47   : > { %520 = vperm.xlu1 %4479, %v406_v28   ;;  %v4817_v28 = vld [vmem:[%s6730_s1 + $0x80] sm:$0xff]  }
  0x4a   : > { %515 = vperm.xlu0 %4480, %v405_v27   ;;  %v4816_v27 = vld [vmem:[%s6730_s1 + $0x78] sm:$0xff]  }
  0x4b   : > { %610 = vperm.xlu1 %4479, %v424_v30   ;;  %v4819_v30 = vld [vmem:[%s6730_s1 + $0x90] sm:$0xff]  }
  0x4e   : > { %605 = vperm.xlu0 %4480, %v423_v29   ;;  %v4818_v29 = vld [vmem:[%s6730_s1 + $0x88] sm:$0xff]  }
  0x4f   : > { %530 = vperm.xlu1 %4479, %v408_v32   ;;  %v4821_v32 = vld [vmem:[%s6730_s1 + $0xa0] sm:$0xff]  }
  0x52   : > { %525 = vperm.xlu0 %4480, %v407_v31   ;;  %v4820_v31 = vld [vmem:[%s6730_s1 + $0x98] sm:$0xff]  }
  0x53   : > { %700 = vperm.xlu1 %4479, %v442_v34   ;;  %v4823_v34 = vld [vmem:[%s6730_s1 + $0xb0] sm:$0xff]  }
  0x56   : > { %615 = vperm.xlu0 %4480, %v425_v33   ;;  %v4822_v33 = vld [vmem:[%s6730_s1 + $0xa8] sm:$0xff]  }
  0x57   : > { %620 = vperm.xlu1 %4479, %v426_v36   ;;  %v4825_v36 = vld [vmem:[%s6730_s1 + $0xc0] sm:$0xff]  }
  0x5a   : > { %535 = vperm.xlu0 %4480, %v409_v35   ;;  %v4824_v35 = vld [vmem:[%s6730_s1 + $0xb8] sm:$0xff]  }
  0x5b   : > { %710 = vperm.xlu1 %4479, %v444_v38   ;;  %v4827_v38 = vld [vmem:[%s6730_s1 + $0xd0] sm:$0xff]  }
  0x5e   : > { %705 = vperm.xlu0 %4480, %v443_v37   ;;  %v4826_v37 = vld [vmem:[%s6730_s1 + $0xc8] sm:$0xff]  }
  0x5f   : > { %630 = vperm.xlu1 %4479, %v428_v40   ;;  %v4829_v40 = vld [vmem:[%s6730_s1 + $0xe0] sm:$0xff]  }
  0x62   : > { %625 = vperm.xlu0 %4480, %v427_v39   ;;  %v4828_v39 = vld [vmem:[%s6730_s1 + $0xd8] sm:$0xff]  }
  0x63   : > { %720 = vperm.xlu1 %4479, %v446_v42   ;;  %v4830_v42 = vld [vmem:[%s6730_s1 + $0xe8] sm:$0xff]  }
  0x66   : > { %715 = vperm.xlu0 %4480, %v445_v41  }
  0x67   : > { %640 = vperm.xlu1 %4479, %v430_v44  }
  0x6a   : > { %635 = vperm.xlu0 %4480, %v429_v43   ;;  %v4831_v43 = vld [vmem:[%s6730_s1 + $0xf0] sm:$0xff]  }
  0x6b   : > { %730 = vperm.xlu1 %4479, %v448_v46  }
  0x6e   : > { %725 = vperm.xlu0 %4480, %v447_v45   ;;  %v4832_v45 = vld [vmem:[%s6730_s1 + $0xf8] sm:$0xff]  }
  0x6f   : > { %650 = vperm.xlu1 %4479, %v432_v48  }
  0x72   : > { %645 = vperm.xlu0 %4480, %v431_v47  }
  0x73   : > { %740 = vperm.xlu1 %4479, %v450_v50  }
  0x76   : > { %735 = vperm.xlu0 %4480, %v449_v49  }
  0x77   : > { %660 = vperm.xlu1 %4479, %v434_v52  }
  0x7a   : > { %655 = vperm.xlu0 %4480, %v433_v51  }
  0x7b   : > { %750 = vperm.xlu1 %4479, %v452_v54  }
  0x7e   : > { %745 = vperm.xlu0 %4480, %v451_v53  }
  0x7f   : > { %670 = vperm.xlu1 %4479, %v436_v56  }
  0x82   : > { %665 = vperm.xlu0 %4480, %v435_v55  }
  0x83   : > { %760 = vperm.xlu1 %4479, %v454_v59  }
  0x86   : > { %755 = vperm.xlu0 %4480, %v453_v58   ;;  %v4835_v58 = vld [vmem:[%s6732_s3 + $0x104] ss:$16 sps:$4 sm:$0xff]  }
  0x87   : > { %680 = vperm.xlu1 %4479, %v438_v62   ;;  %2129 = vmatprep.mubr.bf16.mxu1 %v4835_v58 }
  0x8a   : > { %675 = vperm.xlu0 %4480, %v437_v61  }
  0x8b   : > { %770 = vperm.xlu1 %4479, %v456_v4  }
  0x8c   : > { %v315_v0 = vpop.permute.xlu0 %314 }
  0x8d   : > { %v319_v2 = vsel %vm318_vm1, 0.0, %v315_v0 }
  0x8e   : > { %765 = vperm.xlu0 %4480, %v455_v63   ;;  %v328_v7 = vsel %vm327_vm3, %v319_v2, %v325_v1  ;;  %v5479_v41 = vpop.permute.xlu1 %540 }
  0x8f   : > { %690 = vperm.xlu1 %4479, %v440_v9  }
  0x90   : > { %v321_v6 = vpop.permute.xlu0 %320 }
  0x91   : > { %v323_v3 = vsel %vm322_vm2, 0.0, %v321_v6 }
  0x92   : > { %v393_v8 = vpack.c.bf16 %v323_v3, %v328_v7  ;;  %685 = vperm.xlu0 %4480, %v439_v5   ;;  %v5488_v44 = vpop.permute.xlu1 %545 }
  0x94   : > { %4432 = vmatprep.subr.msk.bf16.mxu0 %vm1035_vm4, %v393_v8  ;;  %v1037_v11 = vsel %vm1035_vm4, %v393_v8, 0 }
  0x95   : > { %4347 = vmatpush3.bf16.msra.mxu0 %v1037_v11 }
  0x96   : > { %775 = vperm.xlu0 %4480, %v457_v10   ;;  %v466_v46 = vpop.permute.xlu1 %465 }
  0x98   : > { %4349 = vmatmul.mubr.msk.bf16.vlgmr.msra.gmra.mrb[0].mxu0 %vm938_vm0, %v4802_v12 }
  0x99   : > { %4352 = vmatprep.mubr.msk.bf16.mxu0 %vm938_vm0, %v4803_v13 }
  0x9a   : > { %695 = vperm.xlu0 %4480, %v441_v14   ;;  %v5495_v48 = vpop.permute.xlu1 %550 }
  0x9e   : > { %v471_v50 = vpop.permute.xlu1 %470 }
  0xa0   : > { %4353 = vmatmul.mubr.msk.bf16.gmra.mrb[4].mxu0 %vm938_vm0, %v4804_v15 }
  0xa1   : > { %4356 = vmatprep.mubr.msk.bf16.mxu0 %vm938_vm0, %v4805_v16  ;;  %v461_v47 = vpop.permute.xlu0 %460 }
  0xa2   : > { %v5499_v52 = vpop.permute.xlu1 %560 }
  0xa5   : > { %v5497_v49 = vpop.permute.xlu0 %555 }
  0xa6   : > { %v481_v54 = vpop.permute.xlu1 %480 }
  0xa8   : > { %4357 = vmatmul.mubr.msk.bf16.gmra.mrb[8].mxu0 %vm938_vm0, %v4806_v17 }
  0xa9   : > { %4360 = vmatprep.mubr.msk.bf16.mxu0 %vm938_vm0, %v4807_v18  ;;  %v476_v51 = vpop.permute.xlu0 %475 }
  0xaa   : > { %v5503_v56 = vpop.permute.xlu1 %570 }
  0xad   : > { %v5501_v53 = vpop.permute.xlu0 %565 }
  0xae   : > { %v491_v59 = vpop.permute.xlu1 %490 }
  0xb0   : > { %4361 = vmatmul.mubr.msk.bf16.gmra.mrb[12].mxu0 %vm938_vm0, %v4808_v19 }
  0xb1   : > { %4364 = vmatprep.mubr.msk.bf16.mxu0 %vm938_vm0, %v4809_v20  ;;  %v486_v55 = vpop.permute.xlu0 %485 }
  0xb2   : > { %v5510_v62 = vpop.permute.xlu1 %580 }
  0xb5   : > { %v5505_v57 = vpop.permute.xlu0 %575 }
  0xb6   : > { %v501_v0 = vpop.permute.xlu1 %500 }
  0xb8   : > { %4365 = vmatmul.mubr.msk.bf16.gmra.mrb[16].mxu0 %vm938_vm0, %v4810_v21 }
  0xb9   : > { %4368 = vmatprep.mubr.msk.bf16.mxu0 %vm938_vm0, %v4811_v22  ;;  %v496_v61 = vpop.permute.xlu0 %495 }
  0xba   : > { %v5516_v2 = vpop.permute.xlu1 %590 }
  0xbd   : > { %v5512_v63 = vpop.permute.xlu0 %585 }
  0xbe   : > { %v511_v5 = vpop.permute.xlu1 %510 }
  0xc0   : > { %4369 = vmatmul.mubr.msk.bf16.gmra.mrb[20].mxu0 %vm938_vm0, %v4812_v23 }
  0xc1   : > { %4372 = vmatprep.mubr.msk.bf16.mxu0 %vm938_vm0, %v4813_v24  ;;  %v5514_v1 = vpop.permute.xlu0 %505 }
  0xc2   : > { %v5520_v3 = vpop.permute.xlu1 %600 }
  0xc5   : > { %v5518_v4 = vpop.permute.xlu0 %595 }
  0xc6   : > { %v5524_v8 = vpop.permute.xlu1 %520 }
  0xc8   : > { %4373 = vmatmul.mubr.msk.bf16.gmra.mrb[24].mxu0 %vm938_vm0, %v4814_v25 }
  0xc9   : > { %4376 = vmatprep.mubr.msk.bf16.mxu0 %vm938_vm0, %v4815_v26  ;;  %v516_v6 = vpop.permute.xlu0 %515 }
  0xca   : > { %v5528_v10 = vpop.permute.xlu1 %610 }
  0xcd   : > { %v5522_v7 = vpop.permute.xlu0 %605 }
  0xce   : > { %v5532_v12 = vpop.permute.xlu1 %530 }
  0xd0   : > { %4377 = vmatmul.mubr.msk.bf16.gmra.mrb[28].mxu0 %vm938_vm0, %v4816_v27 }
  0xd1   : > { %4380 = vmatprep.mubr.msk.bf16.mxu0 %vm938_vm0, %v4817_v28  ;;  %v5526_v9 = vpop.permute.xlu0 %525 }
  0xd2   : > { %v5536_v14 = vpop.permute.xlu1 %700 }
  0xd5   : > { %v5530_v11 = vpop.permute.xlu0 %615 }
  0xd6   : > { %v5540_v23 = vpop.permute.xlu1 %620 }
  0xd8   : > { %4381 = vmatmul.mubr.msk.bf16.gmra.mrb[32].mxu0 %vm938_vm0, %v4818_v29 }
  0xd9   : > { %4384 = vmatprep.mubr.msk.bf16.mxu0 %vm938_vm0, %v4819_v30  ;;  %v5534_v13 = vpop.permute.xlu0 %535 }
  0xdd   : > { %v5538_v15 = vpop.permute.xlu0 %705 }
  0xe0   : > { %4385 = vmatmul.mubr.msk.bf16.gmra.mrb[36].mxu0 %vm938_vm0, %v4820_v31 }
  0xe1   : > { %4388 = vmatprep.mubr.msk.bf16.mxu0 %vm938_vm0, %v4821_v32  ;;  %v5542_v27 = vpop.permute.xlu0 %625 }
  0xe8   : > { %4389 = vmatmul.mubr.msk.bf16.gmra.mrb[40].mxu0 %vm938_vm0, %v4822_v33 }
  0xe9   : > { %4392 = vmatprep.mubr.msk.bf16.mxu0 %vm938_vm0, %v4823_v34 }
  0xf0   : > { %4393 = vmatmul.mubr.msk.bf16.gmra.mrb[44].mxu0 %vm938_vm0, %v4824_v35 }
  0xf1   : > { %4396 = vmatprep.mubr.msk.bf16.mxu0 %vm938_vm0, %v4825_v36 }
  0xf8   : > { %4397 = vmatmul.mubr.msk.bf16.gmra.mrb[48].mxu0 %vm938_vm0, %v4826_v37  ;;  %v5554_v37 = vpop.permute.xlu1 %710 }
  0xf9   : > { %4400 = vmatprep.mubr.msk.bf16.mxu0 %vm938_vm0, %v4827_v38 }
 0x100   : > { %4401 = vmatmul.mubr.msk.bf16.gmra.mrb[52].mxu0 %vm938_vm0, %v4828_v39 }
 0x101   : > { %4404 = vmatprep.mubr.msk.bf16.mxu0 %vm938_vm0, %v4829_v40 }
 0x108   : > { %4405 = vmatmul.mubr.msk.bf16.gmra.mrb[56].mxu0 %vm938_vm0, %v4830_v42 }
 0x109   : > { %4408 = vmatprep.mubr.msk.bf16.mxu0 %vm938_vm0, %v4831_v43  ;;  %v5556_v43 = vpop.permute.xlu0 %715 }
 0x110   : > { %4409 = vmatmul.mubr.msk.bf16.gmra.mrb[60].mxu0 %vm938_vm0, %v4832_v45 }
 0x16b   : > { %v4350_v16 = vpop.f32.mrb[0].mxu0 }
 0x16c   : > { %v1082_v17 = vadd.f32 %v4350_v16, %v471_v50  ;;  %v1073_v18 = vpop.f32.mrb[1].mxu0  ;;  %v5564_v16 = vpop.permute.xlu1 %630 }
 0x16d   : > { %v1074_v19 = vadd.f32 %v1073_v18, %v461_v47  ;;  %v4351_v20 = vpop.f32.mrb[2].mxu0 }
 0x16e   : > { %v1085_v21 = vadd.f32 %v4351_v20, %v476_v51  ;;  %v1076_v22 = vpop.f32.mrb[3].mxu0  ;;  %v1330_v25 = vmax.f32 %v1082_v17, 0.0 }
 0x16f   : > { %v1077_v24 = vadd.f32 %v1076_v22, %v466_v46  ;;  %v1328_v28 = vmax.f32 %v1074_v19, 0.0  ;;  %v5572_v19 = vpop.permute.xlu0 %635 }
 0x170   : > { %v1331_v26 = vmax.f32 %v1085_v21, 0.0 }
 0x171   : > { %v1329_v29 = vmax.f32 %v1077_v24, 0.0 }
 0x172   : > { %v5544_v30 = vpack.i.bf16 %v1331_v26, %v1330_v25  ;;  %v5546_v31 = vpack.c.bf16 %v1331_v26, %v1330_v25 }
 0x173   : > { %v5548_v32 = vpack.i.bf16 %v1329_v29, %v1328_v28  ;;  %v4354_v33 = vpop.f32.mrb[4].mxu0  ;;  %v5550_v34 = vpack.c.bf16 %v1329_v29, %v1328_v28  ;;  %v5577_v29 = vpop.permute.xlu1 %720 }
 0x174   : > { %v1098_v35 = vadd.f32 %v4354_v33, %v491_v59  ;;  %4482 = vrot.lane.b32.xlu1 %v5544_v30, %s5046_s26  ;;  %v1089_v36 = vpop.f32.mrb[5].mxu0 }
 0x175   : > { %v1090_v38 = vadd.f32 %v1089_v36, %v481_v54  ;;  %v4355_v39 = vpop.f32.mrb[6].mxu0 }
 0x176   : > { %v1101_v40 = vadd.f32 %v4355_v39, %v496_v61  ;;  %v1092_v42 = vpop.f32.mrb[7].mxu0  ;;  %v1334_v46 = vmax.f32 %v1098_v35, 0.0 }
 0x177   : > { %v1093_v45 = vadd.f32 %v1092_v42, %v486_v55  ;;  %v1332_v50 = vmax.f32 %v1090_v38, 0.0  ;;  %v5583_v38 = vpop.permute.xlu0 %725 }
 0x178   : > { %v1335_v47 = vmax.f32 %v1101_v40, 0.0  ;;  %4487 = vrot.lane.b32.xlu1 %v5548_v32, %s5046_s26 }
 0x179   : > { %v1333_v51 = vmax.f32 %v1093_v45, 0.0 }
 0x17a   : > { %v5560_v58 = vpack.i.bf16 %v1335_v47, %v1334_v46  ;;  %v5562_v59 = vpack.c.bf16 %v1335_v47, %v1334_v46 }
 0x17b   : > { %v5566_v54 = vpack.i.bf16 %v1333_v51, %v1332_v50  ;;  %v4358_v61 = vpop.f32.mrb[8].mxu0  ;;  %v5568_v17 = vpack.c.bf16 %v1333_v51, %v1332_v50  ;;  %v5594_v50 = vpop.permute.xlu1 %640 }
 0x17c   : > { %v1114_v18 = vadd.f32 %v4358_v61, %v511_v5  ;;  %v1105_v55 = vpop.f32.mrb[9].mxu0  ;;  %4492 = vrot.lane.b32.xlu1 %v5560_v58, %s5046_s26 }
 0x17d   : > { %v1106_v20 = vadd.f32 %v1105_v55, %v501_v0  ;;  %v4359_v21 = vpop.f32.mrb[10].mxu0 }
 0x17e   : > { %v1117_v22 = vadd.f32 %v4359_v21, %v516_v6  ;;  %v1108_v24 = vpop.f32.mrb[11].mxu0  ;;  %v1338_v26 = vmax.f32 %v1114_v18, 0.0 }
 0x17f   : > { %v1109_v25 = vadd.f32 %v1108_v24, %v5514_v1  ;;  %v1336_v5 = vmax.f32 %v1106_v20, 0.0 }
 0x180   : > { %v1339_v28 = vmax.f32 %v1117_v22, 0.0  ;;  %4497 = vrot.lane.b32.xlu1 %v5566_v54, %s5046_s26 }
 0x181   : > { %v1337_v33 = vmax.f32 %v1109_v25, 0.0 }
 0x182   : > { %v5579_v35 = vpack.i.bf16 %v1339_v28, %v1338_v26  ;;  %v5581_v36 = vpack.c.bf16 %v1339_v28, %v1338_v26  ;;  %v5610_v26 = vpop.permute.xlu1 %730 }
 0x183   : > { %v5585_v0 = vpack.i.bf16 %v1337_v33, %v1336_v5  ;;  %v4362_v6 = vpop.f32.mrb[12].mxu0  ;;  %v5587_v39 = vpack.c.bf16 %v1337_v33, %v1336_v5 }
 0x184   : > { %v1130_v1 = vadd.f32 %v4362_v6, %v5532_v12  ;;  %v1121_v40 = vpop.f32.mrb[13].mxu0  ;;  %4502 = vrot.lane.b32.xlu1 %v5579_v35, %s5046_s26  ;;  %v5599_v12 = vpop.permute.xlu0 %645 }
 0x185   : > { %v1122_v42 = vadd.f32 %v1121_v40, %v5524_v8  ;;  %v4363_v45 = vpop.f32.mrb[14].mxu0 }
 0x186   : > { %v1133_v46 = vadd.f32 %v4363_v45, %v5534_v13  ;;  %v1124_v47 = vpop.f32.mrb[15].mxu0  ;;  %v1342_v61 = vmax.f32 %v1130_v1, 0.0 }
 0x187   : > { %v1125_v51 = vadd.f32 %v1124_v47, %v5526_v9  ;;  %v1340_v55 = vmax.f32 %v1122_v42, 0.0 }
 0x188   : > { %v1343_v18 = vmax.f32 %v1133_v46, 0.0  ;;  %4507 = vrot.lane.b32.xlu1 %v5585_v0, %s5046_s26  ;;  %v5614_v1 = vpop.permute.xlu0 %735 }
 0x189   : > { %v1341_v20 = vmax.f32 %v1125_v51, 0.0 }
 0x18a   : > { %v5601_v21 = vpack.i.bf16 %v1343_v18, %v1342_v61  ;;  %v5603_v8 = vpack.c.bf16 %v1343_v18, %v1342_v61  ;;  %v5619_v61 = vpop.permute.xlu1 %650 }
 0x18b   : > { %v5605_v22 = vpack.i.bf16 %v1341_v20, %v1340_v55  ;;  %v4366_v13 = vpop.f32.mrb[16].mxu0  ;;  %v5607_v24 = vpack.c.bf16 %v1341_v20, %v1340_v55 }
 0x18c   : > { %v1146_v9 = vadd.f32 %v4366_v13, %v5495_v48  ;;  %v1137_v25 = vpop.f32.mrb[17].mxu0 }
 0x18d   : > { %v1138_v28 = vadd.f32 %v1137_v25, %v5479_v41  ;;  %v4367_v5 = vpop.f32.mrb[18].mxu0 }
 0x18e   : > { %v1149_v33 = vadd.f32 %v4367_v5, %v5497_v49  ;;  %v1140_v6 = vpop.f32.mrb[19].mxu0  ;;  %v1346_v42 = vmax.f32 %v1146_v9, 0.0 }
 0x18f   : > { %v1141_v40 = vadd.f32 %v1140_v6, %v5488_v44  ;;  %v1344_v46 = vmax.f32 %v1138_v28, 0.0  ;;  %v5626_v44 = vpop.permute.xlu0 %655  ;;  %v5634_v6 = vpop.permute.xlu1 %740 }
 0x190   : > { %v1347_v45 = vmax.f32 %v1149_v33, 0.0 }
 0x191   : > { %v1345_v47 = vmax.f32 %v1141_v40, 0.0 }
 0x192   : > { %v5617_v51 = vpack.i.bf16 %v1347_v45, %v1346_v42  ;;  %v1625_v48 = vpack.c.bf16 %v1347_v45, %v1346_v42 }
 0x193   : > { %v5621_v18 = vpack.i.bf16 %v1345_v47, %v1344_v46  ;;  %v4370_v41 = vpop.f32.mrb[20].mxu0  ;;  %v1624_v55 = vpack.c.bf16 %v1345_v47, %v1344_v46  ;;  %v5639_v45 = vpop.permute.xlu0 %745 }
 0x194   : > { %v1162_v49 = vadd.f32 %v4370_v41, %v5503_v56  ;;  %v1153_v20 = vpop.f32.mrb[21].mxu0  ;;  %4512 = vrot.lane.b32.xlu1 %v5617_v51, %s5046_s26 }
 0x195   : > { %v1154_v13 = vadd.f32 %v1153_v20, %v5499_v52  ;;  %v4371_v9 = vpop.f32.mrb[22].mxu0  ;;  %3953 = vmatprep.subr.bf16.mxu1 %v1624_v55  ;;  %v5649_v20 = vpop.permute.xlu1 %660 }
 0x196   : > { %v1165_v25 = vadd.f32 %v4371_v9, %v5505_v57  ;;  %v1156_v28 = vpop.f32.mrb[23].mxu0  ;;  %3954 = vmatpush3.bf16.msra.mxu1 %v5550_v34  ;;  %v1350_v33 = vmax.f32 %v1162_v49, 0.0 }
 0x197   : > { %v1157_v5 = vadd.f32 %v1156_v28, %v5501_v53  ;;  %3955 = vmatprep.subr.bf16.mxu1 %v1625_v48  ;;  %v1348_v40 = vmax.f32 %v1154_v13, 0.0 }
 0x198   : > { %v1351_v56 = vmax.f32 %v1165_v25, 0.0  ;;  %4517 = vrot.lane.b32.xlu1 %v5621_v18, %s5046_s26  ;;  %v5654_v25 = vpop.permute.xlu0 %665 }
 0x199   : > { %v1349_v42 = vmax.f32 %v1157_v5, 0.0 }
 0x19a   : > { %v5636_v52 = vpack.i.bf16 %v1351_v56, %v1350_v33  ;;  %3956 = vmatpush3.bf16.msra.mxu1 %v5546_v31  ;;  %v1627_v57 = vpack.c.bf16 %v1351_v56, %v1350_v33 }
 0x19b   : > { %v5641_v34 = vpack.i.bf16 %v1349_v42, %v1348_v40  ;;  %v4374_v53 = vpop.f32.mrb[24].mxu0  ;;  %v1626_v46 = vpack.c.bf16 %v1349_v42, %v1348_v40  ;;  %v5664_v42 = vpop.permute.xlu1 %750 }
 0x19c   : > { %v1178_v47 = vadd.f32 %v4374_v53, %v5516_v2  ;;  %v1169_v48 = vpop.f32.mrb[25].mxu0  ;;  %4522 = vrot.lane.b32.xlu1 %v5636_v52, %s5046_s26 }
 0x19d   : > { %v1170_v41 = vadd.f32 %v1169_v48, %v5510_v62  ;;  %v4375_v55 = vpop.f32.mrb[26].mxu0  ;;  %3957 = vmatprep.subr.bf16.mxu1 %v1626_v46 }
 0x19e   : > { %v1181_v49 = vadd.f32 %v4375_v55, %v5518_v4  ;;  %v1172_v31 = vpop.f32.mrb[27].mxu0  ;;  %3958 = vmatpush3.bf16.msra.mxu1 %v5568_v17  ;;  %v1354_v9 = vmax.f32 %v1178_v47, 0.0  ;;  %v5669_v47 = vpop.permute.xlu0 %755 }
 0x19f   : > { %v1173_v13 = vadd.f32 %v1172_v31, %v5512_v63  ;;  %3959 = vmatprep.subr.bf16.mxu1 %v1627_v57  ;;  %v1352_v62 = vmax.f32 %v1170_v41, 0.0  ;;  %v671_v31 = vpop.permute.xlu1 %670 }
 0x1a0   : > { %v1355_v2 = vmax.f32 %v1181_v49, 0.0  ;;  %4527 = vrot.lane.b32.xlu1 %v5641_v34, %s5046_s26 }
 0x1a1   : > { %v1353_v28 = vmax.f32 %v1173_v13, 0.0 }
 0x1a2   : > { %v5656_v5 = vpack.i.bf16 %v1355_v2, %v1354_v9  ;;  %3960 = vmatpush3.bf16.msra.mxu1 %v5562_v59  ;;  %v1629_v4 = vpack.c.bf16 %v1355_v2, %v1354_v9 }
 0x1a3   : > { %v5659_v17 = vpack.i.bf16 %v1353_v28, %v1352_v62  ;;  %v4378_v33 = vpop.f32.mrb[28].mxu0  ;;  %v1628_v56 = vpack.c.bf16 %v1353_v28, %v1352_v62  ;;  %v676_v62 = vpop.permute.xlu0 %675 }
 0x1a4   : > { %v1194_v63 = vadd.f32 %v4378_v33, %v5528_v10  ;;  %v1185_v40 = vpop.f32.mrb[29].mxu0  ;;  %4532 = vrot.lane.b32.xlu1 %v5656_v5, %s5046_s26 }
 0x1a5   : > { %v1186_v57 = vadd.f32 %v1185_v40, %v5520_v3  ;;  %v4379_v53 = vpop.f32.mrb[30].mxu0  ;;  %3961 = vmatprep.subr.bf16.mxu1 %v1628_v56 }
 0x1a6   : > { %v1197_v46 = vadd.f32 %v4379_v53, %v5530_v11  ;;  %v1188_v59 = vpop.f32.mrb[31].mxu0  ;;  %3962 = vmatpush3.bf16.msra.mxu1 %v5587_v39  ;;  %v1358_v10 = vmax.f32 %v1194_v63, 0.0 }
 0x1a7   : > { %v1189_v48 = vadd.f32 %v1188_v59, %v5522_v7  ;;  %3963 = vmatprep.subr.bf16.mxu1 %v1629_v4  ;;  %v1356_v55 = vmax.f32 %v1186_v57, 0.0  ;;  %v5704_v59 = vpop.permute.xlu0 %765 }
 0x1a8   : > { %v1359_v41 = vmax.f32 %v1197_v46, 0.0  ;;  %4537 = vrot.lane.b32.xlu1 %v5659_v17, %s5046_s26  ;;  %v4836_v46 = vld [vmem:[%s6732_s3 + $0x124] ss:$16 sps:$4 sm:$0xff]  }
 0x1a9   : > { %v1357_v49 = vmax.f32 %v1189_v48, 0.0 }
 0x1aa   : > { %v5674_v3 = vpack.i.bf16 %v1359_v41, %v1358_v10  ;;  %3964 = vmatpush3.bf16.msra.mxu1 %v5581_v36  ;;  %v1631_v11 = vpack.c.bf16 %v1359_v41, %v1358_v10 }
 0x1ab   : > { %v5677_v13 = vpack.i.bf16 %v1357_v49, %v1356_v55  ;;  %v4382_v39 = vpop.f32.mrb[32].mxu0  ;;  %v1630_v9 = vpack.c.bf16 %v1357_v49, %v1356_v55 }
 0x1ac   : > { %v1210_v7 = vadd.f32 %v4382_v39, %v5564_v16  ;;  %v1201_v2 = vpop.f32.mrb[33].mxu0  ;;  %4542 = vrot.lane.b32.xlu1 %v5605_v22, %s5046_s26  ;;  %v4877_v16 = vld [vmem:[%s6732_s3 + $0x4] ss:$16 sps:$4 sm:$0xff]  }
 0x1ad   : > { %v1202_v28 = vadd.f32 %v1201_v2, %v5540_v23  ;;  %v4383_v4 = vpop.f32.mrb[34].mxu0  ;;  %3965 = vmatprep.subr.bf16.mxu1 %v1630_v9  ;;  %v5691_v23 = vpop.permute.xlu1 %760  ;;  %2483 = vmatprep.mubr.bf16.mxu0 %v4877_v16 }
 0x1ae   : > { %v1213_v33 = vadd.f32 %v4383_v4, %v5572_v19  ;;  %v1204_v36 = vpop.f32.mrb[35].mxu0  ;;  %3966 = vmatpush3.bf16.msra.mxu1 %v5607_v24  ;;  %v1362_v63 = vmax.f32 %v1210_v7, 0.0  ;;  %v4833_v19 = vld [vmem:[%s6732_s3 + $0x100] ss:$16 sps:$4 sm:$0xff]   ;;  %v686_v4 = vpop.permute.xlu0 %685 }
 0x1af   : > { %v1205_v56 = vadd.f32 %v1204_v36, %v5542_v27  ;;  %3967 = vmatprep.subr.bf16.mxu1 %v1631_v11  ;;  %v1360_v57 = vmax.f32 %v1202_v28, 0.0 }
 0x1b0   : > { %v1363_v40 = vmax.f32 %v1213_v33, 0.0  ;;  %4547 = vrot.lane.b32.xlu1 %v5677_v13, %s5046_s26 }
 0x1b1   : > { %v1361_v53 = vmax.f32 %v1205_v56, 0.0  ;;  %v681_v7 = vpop.permute.xlu1 %680 }
 0x1b2   : > { %v5696_v24 = vpack.i.bf16 %v1363_v40, %v1362_v63  ;;  %v5698_v27 = vpack.c.bf16 %v1363_v40, %v1362_v63  ;;  %3968 = vmatpush3.bf16.msra.mxu1 %v5603_v8 }
 0x1b3   : > { %v5706_v48 = vpack.i.bf16 %v1361_v53, %v1360_v57  ;;  %v5708_v10 = vpack.c.bf16 %v1361_v53, %v1360_v57  ;;  %v4386_v41 = vpop.f32.mrb[36].mxu0 }
 0x1b4   : > { %v1226_v55 = vadd.f32 %v4386_v41, %v5619_v61  ;;  %4552 = vrot.lane.b32.xlu0 %v5696_v24, %s5046_s26  ;;  %v1217_v49 = vpop.f32.mrb[37].mxu0  ;;  %4617 = vrot.lane.b32.xlu1 %v5674_v3, %s5046_s26 }
 0x1b5   : > { %v1218_v8 = vadd.f32 %v1217_v49, %v5594_v50  ;;  %v4387_v11 = vpop.f32.mrb[38].mxu0  ;;  %2130 = vmatmul.mubr.bf16.vlgmr.msra.gmra.mrb[0].mxu1 %v4833_v19  ;;  %v5740_v19 = vpop.permute.xlu1 %770 }
 0x1b6   : > { %v1229_v39 = vadd.f32 %v4387_v11, %v5626_v44  ;;  %v1220_v9 = vpop.f32.mrb[39].mxu0  ;;  %2137 = vmatprep.mubr.bf16.mxu1 %v4836_v46  ;;  %v1366_v28 = vmax.f32 %v1226_v55, 0.0  ;;  %v4838_v44 = vld [vmem:[%s6732_s3 + $0x120] ss:$16 sps:$4 sm:$0xff]  }
 0x1b7   : > { %v1221_v2 = vadd.f32 %v1220_v9, %v5599_v12  ;;  %v1364_v33 = vmax.f32 %v1218_v8, 0.0  ;;  %v4839_v12 = vld [vmem:[%s6732_s3 + $0x144] ss:$16 sps:$4 sm:$0xff]   ;;  %v5743_v8 = vpop.permute.xlu0 %775 }
 0x1b8   : > { %v1367_v61 = vmax.f32 %v1229_v39, 0.0  ;;  %4557 = vrot.lane.b32.xlu0 %v5706_v48, %s5046_s26  ;;  %4632 = vrot.lane.b32.xlu1 %v5601_v21, %s5046_s26 }
 0x1b9   : > { %v1365_v50 = vmax.f32 %v1221_v2, 0.0 }
 0x1ba   : > { %v5725_v36 = vpack.i.bf16 %v1367_v61, %v1366_v28  ;;  %v5727_v56 = vpack.c.bf16 %v1367_v61, %v1366_v28  ;;  %v691_v28 = vpop.permute.xlu1 %690 }
 0x1bb   : > { %v5732_v63 = vpack.i.bf16 %v1365_v50, %v1364_v33  ;;  %v5734_v40 = vpack.c.bf16 %v1365_v50, %v1364_v33  ;;  %v4390_v16 = vpop.f32.mrb[40].mxu0 }
 0x1bc   : > { %v1242_v57 = vadd.f32 %v4390_v16, %v671_v31  ;;  %v1233_v53 = vpop.f32.mrb[41].mxu0  ;;  %4562 = vrot.lane.b32.xlu0 %v5725_v36, %s5046_s26  ;;  %4642 = vrot.lane.b32.xlu1 %v5621_v18, %s5047_s13 }
 0x1bd   : > { %v1234_v46 = vadd.f32 %v1233_v53, %v5649_v20  ;;  %v4391_v41 = vpop.f32.mrb[42].mxu0  ;;  %2138 = vmatmul.mubr.bf16.gmra.mrb[4].mxu1 %v4838_v44  ;;  %v4841_v20 = vld [vmem:[%s6732_s3 + $0x140] ss:$16 sps:$4 sm:$0xff]  }
 0x1be   : > { %v1245_v55 = vadd.f32 %v4391_v41, %v676_v62  ;;  %v1236_v49 = vpop.f32.mrb[43].mxu0  ;;  %2145 = vmatprep.mubr.bf16.mxu1 %v4839_v12  ;;  %v1370_v11 = vmax.f32 %v1242_v57, 0.0  ;;  %v696_v12 = vpop.permute.xlu0 %695 }
 0x1bf   : > { %v1237_v31 = vadd.f32 %v1236_v49, %v5654_v25  ;;  %v1368_v18 = vmax.f32 %v1234_v46, 0.0  ;;  %v4842_v25 = vld [vmem:[%s6732_s3 + $0x164] ss:$16 sps:$4 sm:$0xff]  }
 0x1c0   : > { %v1371_v39 = vmax.f32 %v1245_v55, 0.0  ;;  %4567 = vrot.lane.b32.xlu0 %v5732_v63, %s5046_s26  ;;  %4652 = vrot.lane.b32.xlu1 %v5548_v32, %s5047_s13 }
 0x1c1   : > { %v1369_v9 = vmax.f32 %v1237_v31, 0.0 }
 0x1c2   : > { %v5753_v62 = vpack.i.bf16 %v1371_v39, %v1370_v11  ;;  %v5755_v2 = vpack.c.bf16 %v1371_v39, %v1370_v11 }
 0x1c3   : > { %v5760_v61 = vpack.i.bf16 %v1369_v9, %v1368_v18  ;;  %v5762_v33 = vpack.c.bf16 %v1369_v9, %v1368_v18  ;;  %v4394_v32 = vpop.f32.mrb[44].mxu0 }
 0x1c4   : > { %v1258_v50 = vadd.f32 %v4394_v32, %v691_v28  ;;  %v1249_v44 = vpop.f32.mrb[45].mxu0  ;;  %4572 = vrot.lane.b32.xlu0 %v5753_v62, %s5046_s26  ;;  %4662 = vrot.lane.b32.xlu1 %v5617_v51, %s5047_s13  ;;  %v4844_v51 = vld [vmem:[%s6732_s3 + $0x160] ss:$16 sps:$4 sm:$0xff]  }
 0x1c5   : > { %v1250_v16 = vadd.f32 %v1249_v44, %v681_v7  ;;  %v4395_v57 = vpop.f32.mrb[46].mxu0  ;;  %2146 = vmatmul.mubr.bf16.gmra.mrb[8].mxu1 %v4841_v20 }
 0x1c6   : > { %v1261_v53 = vadd.f32 %v4395_v57, %v696_v12  ;;  %v1252_v46 = vpop.f32.mrb[47].mxu0  ;;  %2153 = vmatprep.mubr.bf16.mxu1 %v4842_v25  ;;  %v1374_v55 = vmax.f32 %v1258_v50, 0.0 }
 0x1c7   : > { %v1253_v41 = vadd.f32 %v1252_v46, %v686_v4  ;;  %v1372_v31 = vmax.f32 %v1250_v16, 0.0  ;;  %v4845_v4 = vld [vmem:[%s6732_s3 + $0x184] ss:$16 sps:$4 sm:$0xff]  }
 0x1c8   : > { %v1375_v49 = vmax.f32 %v1261_v53, 0.0  ;;  %4577 = vrot.lane.b32.xlu0 %v5760_v61, %s5046_s26  ;;  %4672 = vrot.lane.b32.xlu1 %v5544_v30, %s5047_s13 }
 0x1c9   : > { %v1373_v11 = vmax.f32 %v1253_v41, 0.0 }
 0x1ca   : > { %v5775_v7 = vpack.i.bf16 %v1375_v49, %v1374_v55  ;;  %v5777_v39 = vpack.c.bf16 %v1375_v49, %v1374_v55 }
 0x1cb   : > { %v5782_v18 = vpack.i.bf16 %v1373_v11, %v1372_v31  ;;  %v5784_v9 = vpack.c.bf16 %v1373_v11, %v1372_v31  ;;  %v4398_v20 = vpop.f32.mrb[48].mxu0 }
 0x1cc   : > { %v1274_v30 = vadd.f32 %v4398_v20, %v5554_v37  ;;  %v1265_v25 = vpop.f32.mrb[49].mxu0  ;;  %4682 = vrot.lane.b32.xlu1 %v5641_v34, %s5047_s13  ;;  %v4847_v34 = vld [vmem:[%s6732_s3 + $0x180] ss:$16 sps:$4 sm:$0xff]  }
 0x1cd   : > { %v1266_v28 = vadd.f32 %v1265_v25, %v5536_v14  ;;  %v4399_v32 = vpop.f32.mrb[50].mxu0  ;;  %2154 = vmatmul.mubr.bf16.gmra.mrb[12].mxu1 %v4844_v51 }
 0x1ce   : > { %v1277_v50 = vadd.f32 %v4399_v32, %v5556_v43  ;;  %v1268_v44 = vpop.f32.mrb[51].mxu0  ;;  %2161 = vmatprep.mubr.bf16.mxu1 %v4845_v4  ;;  %v1378_v16 = vmax.f32 %v1274_v30, 0.0  ;;  %v4848_v43 = vld [vmem:[%s6732_s3 + $0x1a4] ss:$16 sps:$4 sm:$0xff]  }
 0x1cf   : > { %v1269_v12 = vadd.f32 %v1268_v44, %v5538_v15  ;;  %v1376_v37 = vmax.f32 %v1266_v28, 0.0 }
 0x1d0   : > { %v1379_v57 = vmax.f32 %v1277_v50, 0.0  ;;  %4692 = vrot.lane.b32.xlu1 %v5566_v54, %s5047_s13 }
 0x1d1   : > { %v1377_v53 = vmax.f32 %v1269_v12, 0.0 }
 0x1d2   : > { %v5797_v14 = vpack.i.bf16 %v1379_v57, %v1378_v16  ;;  %v1641_v46 = vpack.c.bf16 %v1379_v57, %v1378_v16 }
 0x1d3   : > { %v5802_v41 = vpack.i.bf16 %v1377_v53, %v1376_v37  ;;  %v4402_v15 = vpop.f32.mrb[52].mxu0  ;;  %v1640_v55 = vpack.c.bf16 %v1377_v53, %v1376_v37 }
 0x1d4   : > { %v1290_v49 = vadd.f32 %v4402_v15, %v5610_v26  ;;  %v1281_v54 = vpop.f32.mrb[53].mxu0  ;;  %4582 = vrot.lane.b32.xlu0 %v5797_v14, %s5046_s26  ;;  %4702 = vrot.lane.b32.xlu1 %v5636_v52, %s5047_s13 }
 0x1d5   : > { %v1282_v31 = vadd.f32 %v1281_v54, %v5577_v29  ;;  %v4403_v11 = vpop.f32.mrb[54].mxu0  ;;  %4017 = vmatprep.subr.bf16.mxu1 %v1640_v55  ;;  %2162 = vmatmul.mubr.bf16.gmra.mrb[16].mxu1 %v4847_v34 }
 0x1d6   : > { %v1293_v51 = vadd.f32 %v4403_v11, %v5614_v1  ;;  %v1284_v4 = vpop.f32.mrb[55].mxu0  ;;  %4018 = vmatpush3.bf16.msra.mxu1 %v5708_v10  ;;  %2169 = vmatprep.mubr.bf16.mxu1 %v4848_v43  ;;  %v1382_v20 = vmax.f32 %v1290_v49, 0.0  ;;  %v4850_v1 = vld [vmem:[%s6732_s3 + $0x1a0] ss:$16 sps:$4 sm:$0xff]   ;;  %v4851_v10 = vld [vmem:[%s6732_s3 + $0x1c4] ss:$16 sps:$4 sm:$0xff]  }
 0x1d7   : > { %v1285_v26 = vadd.f32 %v1284_v4, %v5583_v38  ;;  %4019 = vmatprep.subr.bf16.mxu1 %v1641_v46  ;;  %v1380_v29 = vmax.f32 %v1282_v31, 0.0 }
 0x1d8   : > { %v1383_v30 = vmax.f32 %v1293_v51, 0.0  ;;  %4587 = vrot.lane.b32.xlu0 %v5802_v41, %s5046_s26  ;;  %4712 = vrot.lane.b32.xlu1 %v5560_v58, %s5047_s13 }
 0x1d9   : > { %v1381_v52 = vmax.f32 %v1285_v26, 0.0 }
 0x1da   : > { %v5820_v25 = vpack.i.bf16 %v1383_v30, %v1382_v20  ;;  %4020 = vmatpush3.bf16.msra.mxu1 %v5698_v27  ;;  %v1643_v38 = vpack.c.bf16 %v1383_v30, %v1382_v20  ;;  %v4859_v20 = vld [vmem:[%s6732_s3 + $0x10c] ss:$16 sps:$4 sm:$0xff]  }
 0x1db   : > { %v5826_v28 = vpack.i.bf16 %v1381_v52, %v1380_v29  ;;  %v4406_v32 = vpop.f32.mrb[56].mxu0  ;;  %v1642_v50 = vpack.c.bf16 %v1381_v52, %v1380_v29  ;;  %v4857_v29 = vld [vmem:[%s6732_s3 + $0x108] ss:$16 sps:$4 sm:$0xff]  }
 0x1dc   : > { %v1306_v58 = vadd.f32 %v4406_v32, %v5664_v42  ;;  %v1297_v44 = vpop.f32.mrb[57].mxu0  ;;  %4592 = vrot.lane.b32.xlu0 %v5820_v25, %s5046_s26  ;;  %4722 = vrot.lane.b32.xlu1 %v5659_v17, %s5047_s13 }
 0x1dd   : > { %v1298_v27 = vadd.f32 %v1297_v44, %v5634_v6  ;;  %v4407_v12 = vpop.f32.mrb[58].mxu0  ;;  %4021 = vmatprep.subr.bf16.mxu1 %v1642_v50  ;;  %2170 = vmatmul.mubr.bf16.gmra.mrb[20].mxu1 %v4850_v1  ;;  %v3052_v1 = vld [vmem:[%s6733_s4 + $0x20] sm:$0xff]  ;;  %v4869_v44 = vld [vmem:[%s6732_s3 + $0x18c] ss:$16 sps:$4 sm:$0xff]  }
 0x1de   : > { %v1309_v16 = vadd.f32 %v4407_v12, %v5669_v47  ;;  %v1300_v57 = vpop.f32.mrb[59].mxu0  ;;  %4022 = vmatpush3.bf16.msra.mxu1 %v5734_v40  ;;  %2177 = vmatprep.mubr.bf16.mxu1 %v4851_v10  ;;  %v1386_v37 = vmax.f32 %v1306_v58, 0.0  ;;  %v4853_v47 = vld [vmem:[%s6732_s3 + $0x1c0] ss:$16 sps:$4 sm:$0xff]   ;;  %v4854_v40 = vld [vmem:[%s6732_s3 + $0x1e4] ss:$16 sps:$4 sm:$0xff]  }
 0x1df   : > { %v1301_v42 = vadd.f32 %v1300_v57, %v5639_v45  ;;  %4023 = vmatprep.subr.bf16.mxu1 %v1643_v38  ;;  %v1384_v6 = vmax.f32 %v1298_v27, 0.0  ;;  %v4865_v38 = vld [vmem:[%s6732_s3 + $0x148] ss:$16 sps:$4 sm:$0xff]   ;;  %v4866_v10 = vld [vmem:[%s6732_s3 + $0x16c] ss:$16 sps:$4 sm:$0xff]   ;;  %v3056_v50 = vld [vmem:[%s6733_s4 + $0x40] sm:$0xff] }
 0x1e0   : > { %v1387_v53 = vmax.f32 %v1309_v16, 0.0  ;;  %4597 = vrot.lane.b32.xlu0 %v5826_v28, %s5046_s26  ;;  %4732 = vrot.lane.b32.xlu1 %v5585_v0, %s5047_s13 }
 0x1e1   : > { %v1385_v17 = vmax.f32 %v1301_v42, 0.0 }
 0x1e2   : > { %v5844_v34 = vpack.i.bf16 %v1387_v53, %v1386_v37  ;;  %4024 = vmatpush3.bf16.msra.mxu1 %v5727_v56  ;;  %v1645_v45 = vpack.c.bf16 %v1387_v53, %v1386_v37 }
 0x1e3   : > { %v5850_v46 = vpack.i.bf16 %v1385_v17, %v1384_v6  ;;  %v4410_v43 = vpop.f32.mrb[60].mxu0  ;;  %v1644_v15 = vpack.c.bf16 %v1385_v17, %v1384_v6  ;;  %v3058_v6 = vld [vmem:[%s6733_s4 + $0x50] sm:$0xff] }
 0x1e4   : > { %v1322_v0 = vadd.f32 %v4410_v43, %v5740_v19  ;;  %v1313_v55 = vpop.f32.mrb[61].mxu0  ;;  %4602 = vrot.lane.b32.xlu0 %v5844_v34, %s5046_s26  ;;  %4742 = vrot.lane.b32.xlu1 %v5656_v5, %s5047_s13 }
 0x1e5   : > { %v1314_v56 = vadd.f32 %v1313_v55, %v5691_v23  ;;  %v4411_v49 = vpop.f32.mrb[62].mxu0  ;;  %4025 = vmatprep.subr.bf16.mxu1 %v1644_v15  ;;  %2178 = vmatmul.mubr.bf16.gmra.mrb[24].mxu1 %v4853_v47  ;;  %v4871_v15 = vld [vmem:[%s6732_s3 + $0x188] ss:$16 sps:$4 sm:$0xff]  }
 0x1e6   : > { %v1325_v54 = vadd.f32 %v4411_v49, %v5743_v8  ;;  %v5859_v31 = vpop.permute.xlu1 %4482  ;;  %v1316_v11 = vpop.f32.mrb[63].mxu0  ;;  %4026 = vmatpush3.bf16.msra.mxu1 %v5762_v33  ;;  %2185 = vmatprep.mubr.bf16.mxu1 %v4854_v40  ;;  %v1390_v51 = vmax.f32 %v1322_v0, 0.0  ;;  %v4856_v8 = vld [vmem:[%s6732_s3 + $0x1e0] ss:$16 sps:$4 sm:$0xff]  }
 0x1e7   : > { %v1317_v19 = vadd.f32 %v1316_v11, %v5704_v59  ;;  %4027 = vmatprep.subr.bf16.mxu1 %v1645_v45  ;;  %v1388_v5 = vmax.f32 %v1314_v56, 0.0  ;;  %v4485_v17 = vunpack.i.h.bf16 %v5859_v31  ;;  %v4484_v47 = vunpack.i.l.bf16 %v5859_v31 }
 0x1e8   : > { %v1391_v4 = vmax.f32 %v1325_v54, 0.0  ;;  %4607 = vrot.lane.b32.xlu0 %v5850_v46, %s5046_s26  ;;  %4752 = vrot.lane.b32.xlu1 %v5579_v35, %s5047_s13 }
 0x1e9   : > { %v1389_v23 = vmax.f32 %v1317_v19, 0.0  ;;  %v3537_v0 = vpack.c.bf16 %v4485_v17, %v4484_v47  ;;  %v4907_v47 = vld [vmem:[%s6732_s3 + $0xc] ss:$16 sps:$4 sm:$0xff]  }
 0x1ea   : > { %v5870_v26 = vpack.i.bf16 %v1391_v4, %v1390_v51  ;;  %v5872_v33 = vpop.permute.xlu1 %4487  ;;  %4028 = vmatpush3.bf16.msra.mxu1 %v5755_v2  ;;  %v1647_v59 = vpack.c.bf16 %v1391_v4, %v1390_v51  ;;  %v3062_v4 = vld [vmem:[%s6733_s4 + $0x70] sm:$0xff] }
 0x1eb   : > { %v5878_v30 = vpack.i.bf16 %v1389_v23, %v1388_v5  ;;  %v1646_v35 = vpack.c.bf16 %v1389_v23, %v1388_v5  ;;  %v4490_v27 = vunpack.i.h.bf16 %v5872_v33 }
 0x1ec   : > { %4612 = vrot.lane.b32.xlu0 %v5782_v18, %s5046_s26  ;;  %4762 = vrot.lane.b32.xlu1 %v5677_v13, %s5047_s13  ;;  %v4860_v13 = vld [vmem:[%s6732_s3 + $0x12c] ss:$16 sps:$4 sm:$0xff]  }
 0x1ed   : > { %4029 = vmatprep.subr.bf16.mxu1 %v1646_v35  ;;  %2186 = vmatmul.mubr.bf16.gmra.mrb[28].mxu1 %v4856_v8 }
 0x1ee   : > { %4030 = vmatpush3.bf16.msra.mxu1 %v5784_v9  ;;  %2226 = vmatprep.mubr.bf16.mxu1 %v4859_v20  ;;  %v5885_v2 = vpop.permute.xlu1 %4492  ;;  %v4874_v20 = vld [vmem:[%s6732_s3 + $0x1a8] ss:$16 sps:$4 sm:$0xff]  }
 0x1ef   : > { %4031 = vmatprep.subr.bf16.mxu1 %v1647_v59  ;;  %v4495_v5 = vunpack.i.h.bf16 %v5885_v2  ;;  %v4494_v23 = vunpack.i.l.bf16 %v5885_v2  ;;  %v3201_v59 = vld [vmem:[%s6735_s6] sm:$0x7] }
 0x1f0   : > { %4622 = vrot.lane.b32.xlu0 %v5878_v30, %s5046_s26  ;;  %4767 = vrot.lane.b32.xlu1 %v5605_v22, %s5047_s13  ;;  %v3048_v22 = vld [vmem:[%s6733_s4] sm:$0xff] }
 0x1f1   : > { %v3547_v35 = vpack.c.bf16 %v4495_v5, %v4494_v23  ;;  %v4887_v5 = vld [vmem:[%s6732_s3 + $0x44] ss:$16 sps:$4 sm:$0xff]   ;;  %v3049_v23 = vld [vmem:[%s6733_s4 + $0x8] sm:$0xff] }
 0x1f2   : > { %4032 = vmatpush3.bf16.msra.mxu1 %v5777_v39  ;;  %v5902_v9 = vpop.permute.xlu1 %4497  ;;  %v4862_v39 = vld [vmem:[%s6732_s3 + $0x128] ss:$16 sps:$4 sm:$0xff]  }
 0x1f3   : > { %v4500_v56 = vunpack.i.h.bf16 %v5902_v9  ;;  %v4499_v49 = vunpack.i.l.bf16 %v5902_v9 }
 0x1f4   : > { %4627 = vrot.lane.b32.xlu0 %v5870_v26, %s5046_s26  ;;  %4777 = vrot.lane.b32.xlu1 %v5674_v3, %s5047_s13  ;;  %v4863_v3 = vld [vmem:[%s6732_s3 + $0x14c] ss:$16 sps:$4 sm:$0xff]  }
 0x1f5   : > { %2227 = vmatmul.mubr.bf16.vlgmr.msra.gmra.mrb[32].mxu1 %v4857_v29 }
 0x1f6   : > { %2234 = vmatprep.mubr.bf16.mxu1 %v4860_v13  ;;  %v5917_v52 = vpop.permute.xlu1 %4502 }
 0x1f8   : > { %4637 = vrot.lane.b32.xlu0 %v5775_v7, %s5046_s26  ;;  %4792 = vrot.lane.b32.xlu1 %v5601_v21, %s5047_s13  ;;  %v3050_v21 = vld [vmem:[%s6733_s4 + $0x10] sm:$0xff] }
 0x1fc   : > { %4647 = vrot.lane.b32.xlu0 %v5802_v41, %s5047_s13  ;;  %3066 = vperm.xlu1 %4479, %v3048_v22   ;;  %v5932_v41 = vpop.permute.xlu1 %4507 }
 0x1fd   : > { %2235 = vmatmul.mubr.bf16.gmra.mrb[36].mxu1 %v4862_v39  ;;  %v4510_v29 = vunpack.i.h.bf16 %v5932_v41  ;;  %v4509_v13 = vunpack.i.l.bf16 %v5932_v41 }
 0x1fe   : > { %2242 = vmatprep.mubr.bf16.mxu1 %v4863_v3 }
 0x1ff   : > { %v3552_v41 = vpack.c.bf16 %v4510_v29, %v4509_v13  ;;  %v4890_v13 = vld [vmem:[%s6732_s3 + $0x64] ss:$16 sps:$4 sm:$0xff]  }
 0x200   : > { %4657 = vrot.lane.b32.xlu0 %v5706_v48, %s5047_s13  ;;  %3076 = vperm.xlu1 %4479, %v3050_v21   ;;  %v3054_v48 = vld [vmem:[%s6733_s4 + $0x30] sm:$0xff] }
 0x204   : > { %4667 = vrot.lane.b32.xlu0 %v5797_v14, %s5047_s13  ;;  %3086 = vperm.xlu1 %4479, %v3052_v1   ;;  %v4868_v14 = vld [vmem:[%s6732_s3 + $0x168] ss:$16 sps:$4 sm:$0xff]   ;;  %v4505_v1 = vunpack.i.h.bf16 %v5917_v52 }
 0x205   : > { %2243 = vmatmul.mubr.bf16.gmra.mrb[40].mxu1 %v4865_v38  ;;  %v4504_v38 = vunpack.i.l.bf16 %v5917_v52 }
 0x206   : > { %v4513_v32 = vpop.permute.xlu1 %4512  ;;  %2250 = vmatprep.mubr.bf16.mxu1 %v4866_v10 }
 0x207   : > { %v4515_v42 = vunpack.i.h.bf16 %v4513_v32  ;;  %v4514_v37 = vunpack.i.l.bf16 %v4513_v32  ;;  %v3557_v32 = vpack.c.bf16 %v4505_v1, %v4504_v38 }
 0x208   : > { %4677 = vrot.lane.b32.xlu0 %v5696_v24, %s5047_s13  ;;  %3096 = vperm.xlu1 %4479, %v3054_v48   ;;  %v4489_v24 = vunpack.i.l.bf16 %v5872_v33  ;;  %v3542_v33 = vpack.c.bf16 %v4500_v56, %v4499_v49 }
 0x209   : > { %v3577_v43 = vpack.c.bf16 %v4515_v42, %v4514_v37 }
 0x20a   : > { %v4518_v58 = vpop.permute.xlu1 %4517  ;;  %v3532_v40 = vpack.c.bf16 %v4490_v27, %v4489_v24 }
 0x20b   : > { %v4520_v12 = vunpack.i.h.bf16 %v4518_v58  ;;  %v4519_v16 = vunpack.i.l.bf16 %v4518_v58 }
 0x20c   : > { %4687 = vrot.lane.b32.xlu0 %v5826_v28, %s5047_s13  ;;  %3106 = vperm.xlu1 %4479, %v3056_v50   ;;  %v3060_v28 = vld [vmem:[%s6733_s4 + $0x60] sm:$0xff]  ;;  %v4884_v50 = vld [vmem:[%s6732_s3 + $0x1ec] ss:$16 sps:$4 sm:$0xff]  }
 0x20d   : > { %v3572_v53 = vpack.c.bf16 %v4520_v12, %v4519_v16  ;;  %2251 = vmatmul.mubr.bf16.gmra.mrb[44].mxu1 %v4868_v14 }
 0x20e   : > { %v4523_v45 = vpop.permute.xlu1 %4522  ;;  %2258 = vmatprep.mubr.bf16.mxu1 %v4869_v44 }
 0x20f   : > { %4081 = vmatprep.subr.msk.bf16.mxu0 %vm5957_vm6, %v3572_v53  ;;  %v4525_v11 = vunpack.i.h.bf16 %v4523_v45  ;;  %v4524_v19 = vunpack.i.l.bf16 %v4523_v45 }
 0x210   : > { %4697 = vrot.lane.b32.xlu0 %v5732_v63, %s5047_s13  ;;  %3116 = vperm.xlu1 %4479, %v3058_v6   ;;  %v4872_v63 = vld [vmem:[%s6732_s3 + $0x1ac] ss:$16 sps:$4 sm:$0xff]  }
 0x211   : > { %4082 = vmatpush3.bf16.msk.msra.mxu0 %vm5957_vm6, %v3532_v40 }
 0x212   : > { %4083 = vmatprep.subr.msk.bf16.mxu0 %vm5957_vm6, %v3577_v43  ;;  %v4528_v55 = vpop.permute.xlu1 %4527 }
 0x213   : > { %v4530_v54 = vunpack.i.h.bf16 %v4528_v55  ;;  %v4529_v31 = vunpack.i.l.bf16 %v4528_v55 }
 0x214   : > { %4707 = vrot.lane.b32.xlu0 %v5820_v25, %s5047_s13  ;;  %3126 = vperm.xlu1 %4479, %v3060_v28   ;;  %v3587_v25 = vpack.c.bf16 %v4525_v11, %v4524_v19  ;;  %v4875_v28 = vld [vmem:[%s6732_s3] ss:$16 sps:$4 sm:$0xff]  }
 0x215   : > { %v3582_v51 = vpack.c.bf16 %v4530_v54, %v4529_v31  ;;  %4084 = vmatpush3.bf16.msk.msra.mxu0 %vm5957_vm6, %v3537_v0  ;;  %2259 = vmatmul.mubr.bf16.gmra.mrb[48].mxu1 %v4871_v15 }
 0x216   : > { %v4533_v8 = vpop.permute.xlu1 %4532  ;;  %2266 = vmatprep.mubr.bf16.mxu1 %v4872_v63 }
 0x217   : > { %4085 = vmatprep.subr.msk.bf16.mxu0 %vm5957_vm6, %v3582_v51  ;;  %v4535_v39 = vunpack.i.h.bf16 %v4533_v8  ;;  %v4534_v3 = vunpack.i.l.bf16 %v4533_v8 }
 0x218   : > { %4717 = vrot.lane.b32.xlu0 %v5725_v36, %s5047_s13  ;;  %3136 = vperm.xlu1 %4479, %v3062_v4   ;;  %v4878_v36 = vld [vmem:[%s6732_s3 + $0x1cc] ss:$16 sps:$4 sm:$0xff]  }
 0x219   : > { %4086 = vmatpush3.bf16.msk.msra.mxu0 %vm5957_vm6, %v3542_v33  ;;  %v3597_v48 = vpack.c.bf16 %v4535_v39, %v4534_v3 }
 0x21a   : > { %4087 = vmatprep.subr.msk.bf16.mxu0 %vm5957_vm6, %v3587_v25  ;;  %v4538_v2 = vpop.permute.xlu1 %4537 }
 0x21b   : > { %v4540_v9 = vunpack.i.h.bf16 %v4538_v2  ;;  %v4539_v22 = vunpack.i.l.bf16 %v4538_v2  ;;  %v4889_v2 = vld [vmem:[%s6732_s3 + $0x40] ss:$16 sps:$4 sm:$0xff]  }
 0x21c   : > { %4727 = vrot.lane.b32.xlu0 %v5850_v46, %s5047_s13  ;;  %3204 = vperm.xlu1 %4479, %v3201_v59   ;;  %v4880_v46 = vld [vmem:[%s6732_s3 + $0x1c8] ss:$16 sps:$4 sm:$0xff]  }
 0x21d   : > { %v3592_v21 = vpack.c.bf16 %v4540_v9, %v4539_v22  ;;  %4088 = vmatpush3.bf16.msk.msra.mxu0 %vm5957_vm6, %v3547_v35  ;;  %2267 = vmatmul.mubr.bf16.gmra.mrb[52].mxu1 %v4874_v20  ;;  %v3053_v22 = vld [vmem:[%s6733_s4 + $0x28] sm:$0xff] }
 0x21e   : > { %v4543_v10 = vpop.permute.xlu1 %4542  ;;  %2274 = vmatprep.mubr.bf16.mxu1 %v4878_v36 }
 0x21f   : > { %4089 = vmatprep.subr.msk.bf16.mxu0 %vm5957_vm6, %v3592_v21  ;;  %v4545_v14 = vunpack.i.h.bf16 %v4543_v10  ;;  %v4544_v58 = vunpack.i.l.bf16 %v4543_v10  ;;  %v3055_v10 = vld [vmem:[%s6733_s4 + $0x38] sm:$0xff] }
 0x220   : > { %4737 = vrot.lane.b32.xlu0 %v5760_v61, %s5047_s13 }
 0x221   : > { %4090 = vmatpush3.bf16.msk.msra.mxu0 %vm5957_vm6, %v3552_v41  ;;  %v3562_v16 = vpack.c.bf16 %v4545_v14, %v4544_v58  ;;  %v3057_v58 = vld [vmem:[%s6733_s4 + $0x48] sm:$0xff] }
 0x222   : > { %4091 = vmatprep.subr.msk.bf16.mxu0 %vm5957_vm6, %v3597_v48  ;;  %v4548_v52 = vpop.permute.xlu1 %4547 }
 0x223   : > { %v4550_v44 = vunpack.i.h.bf16 %v4548_v52  ;;  %v4549_v61 = vunpack.i.l.bf16 %v4548_v52 }
 0x224   : > { %4747 = vrot.lane.b32.xlu0 %v5844_v34, %s5047_s13  ;;  %v4886_v34 = vld [vmem:[%s6732_s3 + $0x1e8] ss:$16 sps:$4 sm:$0xff]  }
 0x225   : > { %v3602_v27 = vpack.c.bf16 %v4550_v44, %v4549_v61  ;;  %4092 = vmatpush3.bf16.msk.msra.mxu0 %vm5957_vm6, %v3557_v32  ;;  %2275 = vmatmul.mubr.bf16.gmra.mrb[56].mxu1 %v4880_v46  ;;  %v4892_v46 = vld [vmem:[%s6732_s3 + $0x60] ss:$16 sps:$4 sm:$0xff]  }
 0x226   : > { %v6039_v24 = vpop.permute.xlu0 %4552  ;;  %v4618_v12 = vpop.permute.xlu1 %4617  ;;  %2282 = vmatprep.mubr.bf16.mxu1 %v4884_v50  ;;  %v4893_v50 = vld [vmem:[%s6732_s3 + $0x84] ss:$16 sps:$4 sm:$0xff]  }
 0x227   : > { %v4620_v42 = vunpack.i.h.bf16 %v4618_v12  ;;  %v4619_v37 = vunpack.i.l.bf16 %v4618_v12  ;;  %4093 = vmatprep.subr.msk.bf16.mxu0 %vm5957_vm6, %v3602_v27 }
 0x228   : > { %4757 = vrot.lane.b32.xlu0 %v5753_v62, %s5047_s13 }
 0x229   : > { %v3607_v53 = vpack.c.bf16 %v4620_v42, %v4619_v37  ;;  %4094 = vmatpush3.bf16.msk.msra.mxu0 %vm5957_vm6, %v3562_v16 }
 0x22a   : > { %v6050_v6 = vpop.permute.xlu0 %4557  ;;  %v4633_v17 = vpop.permute.xlu1 %4632 }
 0x22b   : > { %v4635_v45 = vunpack.i.h.bf16 %v4633_v17  ;;  %v4634_v40 = vunpack.i.l.bf16 %v4633_v17  ;;  %4095 = vmatprep.subr.msk.bf16.mxu0 %vm5957_vm6, %v3607_v53  ;;  %v4560_v44 = vunpack.i.h.bf16 %v6050_v6  ;;  %v4559_v61 = vunpack.i.l.bf16 %v6050_v6 }
 0x22c   : > { %4772 = vrot.lane.b32.xlu0 %v5782_v18, %s5047_s13  ;;  %v4881_v18 = vld [vmem:[%s6732_s3 + $0x24] ss:$16 sps:$4 sm:$0xff]  }
 0x22d   : > { %v3567_v62 = vpack.c.bf16 %v4635_v45, %v4634_v40  ;;  %2283 = vmatmul.mubr.bf16.gmra.mrb[60].mxu1 %v4886_v34  ;;  %v4554_v45 = vunpack.i.l.bf16 %v6039_v24 }
 0x22e   : > { %v4643_v43 = vpop.permute.xlu1 %4642  ;;  %2580 = vmatprep.mubr.bf16.mxu1 %v4907_v47  ;;  %v6073_v55 = vpop.permute.xlu0 %4562  ;;  %v4555_v47 = vunpack.i.h.bf16 %v6039_v24  ;;  %v4896_v24 = vld [vmem:[%s6732_s3 + $0xa4] ss:$16 sps:$4 sm:$0xff]  }
 0x22f   : > { %v4645_v15 = vunpack.i.h.bf16 %v4643_v43  ;;  %v4644_v0 = vunpack.i.l.bf16 %v4643_v43  ;;  %4096 = vmatpush3.bf16.msk.msra.mxu0 %vm5957_vm6, %v3567_v62  ;;  %v3059_v62 = vld [vmem:[%s6733_s4 + $0x58] sm:$0xff]  ;;  %v3612_v43 = vpack.c.bf16 %v4560_v44, %v4559_v61 }
 0x230   : > { %4782 = vrot.lane.b32.xlu0 %v5878_v30, %s5047_s13  ;;  %v4883_v30 = vld [vmem:[%s6732_s3 + $0x20] ss:$16 sps:$4 sm:$0xff]  }
 0x231   : > { %v3796_v63 = vpack.c.bf16 %v4645_v15, %v4644_v0  ;;  %v4895_v0 = vld [vmem:[%s6732_s3 + $0x80] ss:$16 sps:$4 sm:$0xff]  }
 0x232   : > { %v4653_v56 = vpop.permute.xlu1 %4652  ;;  %2484 = vmatmul.mubr.bf16.vlgmr.msra.gmra.mrb[64].mxu0 %v4875_v28  ;;  %v6081_v11 = vpop.permute.xlu0 %4567 }
 0x233   : > { %v4655_v49 = vunpack.i.h.bf16 %v4653_v56  ;;  %v4654_v54 = vunpack.i.l.bf16 %v4653_v56  ;;  %4209 = vmatprep.subr.msk.bf16.mxu0 %vm6069_vm8, %v3796_v63  ;;  %2491 = vmatprep.mubr.bf16.mxu0 %v4881_v18 }
 0x234   : > { %4787 = vrot.lane.b32.xlu0 %v5870_v26, %s5047_s13 }
 0x235   : > { %v3756_v31 = vpack.c.bf16 %v4655_v49, %v4654_v54  ;;  %v3617_v49 = vpack.c.bf16 %v4555_v47, %v4554_v45 }
 0x236   : > { %v4663_v19 = vpop.permute.xlu1 %4662  ;;  %v6098_v59 = vpop.permute.xlu0 %4572 }
 0x237   : > { %v4665_v51 = vunpack.i.h.bf16 %v4663_v19  ;;  %v4664_v4 = vunpack.i.l.bf16 %v4663_v19  ;;  %4210 = vmatpush3.bf16.msk.msra.mxu0 %vm6069_vm8, %v3756_v31  ;;  %v3061_v31 = vld [vmem:[%s6733_s4 + $0x68] sm:$0xff]  ;;  %v4570_v19 = vunpack.i.h.bf16 %v6081_v11 }
 0x238   : > { %4797 = vrot.lane.b32.xlu0 %v5775_v7, %s5047_s13  ;;  %v3051_v7 = vld [vmem:[%s6733_s4 + $0x18] sm:$0xff] }
 0x239   : > { %v3801_v26 = vpack.c.bf16 %v4665_v51, %v4664_v4 }
 0x23a   : > { %v4673_v8 = vpop.permute.xlu1 %4672  ;;  %2492 = vmatmul.mubr.bf16.gmra.mrb[68].mxu0 %v4883_v30  ;;  %v6114_v39 = vpop.permute.xlu0 %4577  ;;  %v4569_v30 = vunpack.i.l.bf16 %v6081_v11  ;;  %v4564_v11 = vunpack.i.l.bf16 %v6073_v55 }
 0x23b   : > { %v4675_v33 = vunpack.i.h.bf16 %v4673_v8  ;;  %v4674_v25 = vunpack.i.l.bf16 %v4673_v8  ;;  %4211 = vmatprep.subr.msk.bf16.mxu0 %vm6069_vm8, %v3801_v26  ;;  %2499 = vmatprep.mubr.bf16.mxu0 %v4887_v5 }
 0x23c   : > { %3071 = vperm.xlu0 %4480, %v3049_v23  }
 0x23d   : > { %v3761_v20 = vpack.c.bf16 %v4675_v33, %v4674_v25 }
 0x23e   : > { %v4683_v35 = vpop.permute.xlu1 %4682 }
 0x23f   : > { %v4685_v36 = vunpack.i.h.bf16 %v4683_v35  ;;  %v4684_v29 = vunpack.i.l.bf16 %v4683_v35  ;;  %4212 = vmatpush3.bf16.msk.msra.mxu0 %vm6069_vm8, %v3761_v20  ;;  %v4565_v20 = vunpack.i.h.bf16 %v6073_v55  ;;  %v4899_v55 = vld [vmem:[%s6732_s3 + $0xc4] ss:$16 sps:$4 sm:$0xff]  }
 0x240   : > { %3081 = vperm.xlu0 %4480, %v3051_v7  }
 0x241   : > { %v3806_v9 = vpack.c.bf16 %v4685_v36, %v4684_v29  ;;  %v3622_v36 = vpack.c.bf16 %v4570_v19, %v4569_v30  ;;  %v4904_v19 = vld [vmem:[%s6732_s3 + $0xe0] ss:$16 sps:$4 sm:$0xff]  }
 0x242   : > { %v4693_v3 = vpop.permute.xlu1 %4692  ;;  %2500 = vmatmul.mubr.bf16.gmra.mrb[72].mxu0 %v4889_v2  ;;  %v3063_v2 = vld [vmem:[%s6733_s4 + $0x78] sm:$0xff] }
 0x243   : > { %v4695_v21 = vunpack.i.h.bf16 %v4693_v3  ;;  %v4694_v1 = vunpack.i.l.bf16 %v4693_v3  ;;  %4213 = vmatprep.subr.msk.bf16.mxu0 %vm6069_vm8, %v3806_v9  ;;  %2507 = vmatprep.mubr.bf16.mxu0 %v4890_v13  ;;  %v4898_v9 = vld [vmem:[%s6732_s3 + $0xa0] ss:$16 sps:$4 sm:$0xff]  }
 0x244   : > { %3091 = vperm.xlu0 %4480, %v3053_v22  }
 0x245   : > { %v3766_v38 = vpack.c.bf16 %v4695_v21, %v4694_v1  ;;  %v3627_v1 = vpack.c.bf16 %v4565_v20, %v4564_v11 }
 0x246   : > { %v4583_v41 = vpop.permute.xlu0 %4582  ;;  %v4703_v48 = vpop.permute.xlu1 %4702 }
 0x247   : > { %v4705_v32 = vunpack.i.h.bf16 %v4703_v48  ;;  %v4704_v52 = vunpack.i.l.bf16 %v4703_v48  ;;  %4214 = vmatpush3.bf16.msk.msra.mxu0 %vm6069_vm8, %v3766_v38  ;;  %v4585_v27 = vunpack.i.h.bf16 %v4583_v41  ;;  %v4584_v12 = vunpack.i.l.bf16 %v4583_v41 }
 0x248   : > { %3101 = vperm.xlu0 %4480, %v3055_v10   ;;  %v4580_v10 = vunpack.i.h.bf16 %v6114_v39  ;;  %v4579_v41 = vunpack.i.l.bf16 %v6114_v39  ;;  %v4575_v39 = vunpack.i.h.bf16 %v6098_v59 }
 0x249   : > { %v3811_v14 = vpack.c.bf16 %v4705_v32, %v4704_v52  ;;  %v3657_v18 = vpack.c.bf16 %v4585_v27, %v4584_v12  ;;  %v4574_v12 = vunpack.i.l.bf16 %v6098_v59  ;;  %v4902_v59 = vld [vmem:[%s6732_s3 + $0xe4] ss:$16 sps:$4 sm:$0xff]  }
 0x24a   : > { %v4588_v16 = vpop.permute.xlu0 %4587  ;;  %v4713_v42 = vpop.permute.xlu1 %4712  ;;  %2508 = vmatmul.mubr.bf16.gmra.mrb[76].mxu0 %v4892_v46 }
 0x24b   : > { %v4590_v37 = vunpack.i.h.bf16 %v4588_v16  ;;  %v4589_v53 = vunpack.i.l.bf16 %v4588_v16  ;;  %v4715_v34 = vunpack.i.h.bf16 %v4713_v42  ;;  %v4714_v17 = vunpack.i.l.bf16 %v4713_v42  ;;  %4215 = vmatprep.subr.msk.bf16.mxu0 %vm6069_vm8, %v3811_v14  ;;  %2515 = vmatprep.mubr.bf16.mxu0 %v4893_v50 }
 0x24c   : > { %3111 = vperm.xlu0 %4480, %v3057_v58   ;;  %v3632_v16 = vpack.c.bf16 %v4580_v10, %v4579_v41 }
 0x24d   : > { %v3652_v40 = vpack.c.bf16 %v4590_v37, %v4589_v53  ;;  %v3771_v6 = vpack.c.bf16 %v4715_v34, %v4714_v17  ;;  %v4901_v53 = vld [vmem:[%s6732_s3 + $0xc0] ss:$16 sps:$4 sm:$0xff]  }
 0x24e   : > { %v4593_v28 = vpop.permute.xlu0 %4592  ;;  %v4723_v15 = vpop.permute.xlu1 %4722 }
 0x24f   : > { %v4725_v63 = vunpack.i.h.bf16 %v4723_v15  ;;  %v4724_v56 = vunpack.i.l.bf16 %v4723_v15  ;;  %4145 = vmatprep.subr.msk.bf16.mxu1 %vm5957_vm6, %v3652_v40  ;;  %4216 = vmatpush3.bf16.msk.msra.mxu0 %vm6069_vm8, %v3771_v6  ;;  %v4595_v51 = vunpack.i.h.bf16 %v4593_v28  ;;  %v4594_v4 = vunpack.i.l.bf16 %v4593_v28 }
 0x250   : > { %3121 = vperm.xlu0 %4480, %v3059_v62   ;;  %4146 = vmatpush3.bf16.msk.msra.mxu1 %vm5957_vm6, %v3612_v43  ;;  %v3637_v40 = vpack.c.bf16 %v4575_v39, %v4574_v12 }
 0x251   : > { %v3816_v54 = vpack.c.bf16 %v4725_v63, %v4724_v56  ;;  %4147 = vmatprep.subr.msk.bf16.mxu1 %vm5957_vm6, %v3657_v18  ;;  %v3667_v22 = vpack.c.bf16 %v4595_v51, %v4594_v4 }
 0x252   : > { %v4598_v5 = vpop.permute.xlu0 %4597  ;;  %v4733_v26 = vpop.permute.xlu1 %4732  ;;  %2516 = vmatmul.mubr.bf16.gmra.mrb[80].mxu0 %v4895_v0 }
 0x253   : > { %v4600_v23 = vunpack.i.h.bf16 %v4598_v5  ;;  %v4599_v8 = vunpack.i.l.bf16 %v4598_v5  ;;  %v4735_v33 = vunpack.i.h.bf16 %v4733_v26  ;;  %v4734_v25 = vunpack.i.l.bf16 %v4733_v26  ;;  %4217 = vmatprep.subr.msk.bf16.mxu0 %vm6069_vm8, %v3816_v54  ;;  %2523 = vmatprep.mubr.bf16.mxu0 %v4896_v24  ;;  %v4931_v26 = vld [vmem:[%s6732_s3 + $0x204] ss:$16 sps:$4 sm:$0xff]  }
 0x254   : > { %3131 = vperm.xlu0 %4480, %v3061_v31   ;;  %4148 = vmatpush3.bf16.msk.msra.mxu1 %vm5957_vm6, %v3617_v49 }
 0x255   : > { %v3662_v7 = vpack.c.bf16 %v4600_v23, %v4599_v8  ;;  %v3776_v35 = vpack.c.bf16 %v4735_v33, %v4734_v25 }
 0x256   : > { %v4603_v29 = vpop.permute.xlu0 %4602  ;;  %v4743_v13 = vpop.permute.xlu1 %4742 }
 0x257   : > { %v4745_v3 = vunpack.i.h.bf16 %v4743_v13  ;;  %v4744_v21 = vunpack.i.l.bf16 %v4743_v13  ;;  %4149 = vmatprep.subr.msk.bf16.mxu1 %vm5957_vm6, %v3662_v7  ;;  %4218 = vmatpush3.bf16.msk.msra.mxu0 %vm6069_vm8, %v3776_v35  ;;  %v4605_v48 = vunpack.i.h.bf16 %v4603_v29  ;;  %v4604_v46 = vunpack.i.l.bf16 %v4603_v29  ;;  %v4905_v13 = vld [vmem:[%s6732_s3 + $0x8] ss:$16 sps:$4 sm:$0xff]  }
 0x258   : > { %3141 = vperm.xlu0 %4480, %v3063_v2   ;;  %4150 = vmatpush3.bf16.msk.msra.mxu1 %vm5957_vm6, %v3622_v36 }
 0x259   : > { %v3821_v38 = vpack.c.bf16 %v4745_v3, %v4744_v21  ;;  %4151 = vmatprep.subr.msk.bf16.mxu1 %vm5957_vm6, %v3667_v22  ;;  %v3677_v34 = vpack.c.bf16 %v4605_v48, %v4604_v46  ;;  %v4908_v21 = vld [vmem:[%s6732_s3 + $0x2c] ss:$16 sps:$4 sm:$0xff]   ;;  %v4910_v46 = vld [vmem:[%s6732_s3 + $0x28] ss:$16 sps:$4 sm:$0xff]  }
 0x25a   : > { %v4608_v32 = vpop.permute.xlu0 %4607  ;;  %v4753_v52 = vpop.permute.xlu1 %4752  ;;  %2524 = vmatmul.mubr.bf16.gmra.mrb[84].mxu0 %v4898_v9  ;;  %v4929_v9 = vld [vmem:[%s6732_s3 + $0x200] ss:$16 sps:$4 sm:$0xff]  }
 0x25b   : > { %v4610_v50 = vunpack.i.h.bf16 %v4608_v32  ;;  %v4609_v14 = vunpack.i.l.bf16 %v4608_v32  ;;  %v4755_v58 = vunpack.i.h.bf16 %v4753_v52  ;;  %v4754_v44 = vunpack.i.l.bf16 %v4753_v52  ;;  %4219 = vmatprep.subr.msk.bf16.mxu0 %vm6069_vm8, %v3821_v38  ;;  %2531 = vmatprep.mubr.bf16.mxu0 %v4899_v55  ;;  %v4935_v55 = vld [vmem:[%s6732_s3 + $0x224] ss:$16 sps:$4 sm:$0xff]   ;;  %v4939_v32 = vld [vmem:[%s6732_s3 + $0x220] ss:$16 sps:$4 sm:$0xff]  }
 0x25c   : > { %4152 = vmatpush3.bf16.msk.msra.mxu1 %vm5957_vm6, %v3627_v1 }
 0x25d   : > { %v3672_v61 = vpack.c.bf16 %v4610_v50, %v4609_v14  ;;  %v3781_v27 = vpack.c.bf16 %v4755_v58, %v4754_v44  ;;  %v4911_v14 = vld [vmem:[%s6732_s3 + $0x4c] ss:$16 sps:$4 sm:$0xff]   ;;  %v4941_v58 = vld [vmem:[%s6732_s3 + $0x244] ss:$16 sps:$4 sm:$0xff]  }
 0x25e   : > { %v4613_v42 = vpop.permute.xlu0 %4612  ;;  %v4763_v37 = vpop.permute.xlu1 %4762 }
 0x25f   : > { %v4765_v17 = vunpack.i.h.bf16 %v4763_v37  ;;  %v4764_v47 = vunpack.i.l.bf16 %v4763_v37  ;;  %4153 = vmatprep.subr.msk.bf16.mxu1 %vm5957_vm6, %v3672_v61  ;;  %4220 = vmatpush3.bf16.msk.msra.mxu0 %vm6069_vm8, %v3781_v27  ;;  %v4615_v6 = vunpack.i.h.bf16 %v4613_v42  ;;  %v4614_v62 = vunpack.i.l.bf16 %v4613_v42  ;;  %v4913_v42 = vld [vmem:[%s6732_s3 + $0x48] ss:$16 sps:$4 sm:$0xff]   ;;  %v4945_v37 = vld [vmem:[%s6732_s3 + $0x240] ss:$16 sps:$4 sm:$0xff]  }
 0x260   : > { %4154 = vmatpush3.bf16.msk.msra.mxu1 %vm5957_vm6, %v3632_v16 }
 0x261   : > { %v3826_v45 = vpack.c.bf16 %v4765_v17, %v4764_v47  ;;  %4155 = vmatprep.subr.msk.bf16.mxu1 %vm5957_vm6, %v3677_v34  ;;  %v3642_v49 = vpack.c.bf16 %v4615_v6, %v4614_v62  ;;  %v4914_v17 = vld [vmem:[%s6732_s3 + $0x6c] ss:$16 sps:$4 sm:$0xff]   ;;  %v4947_v47 = vld [vmem:[%s6732_s3 + $0x264] ss:$16 sps:$4 sm:$0xff]  }
 0x262   : > { %v4623_v43 = vpop.permute.xlu0 %4622  ;;  %v4768_v28 = vpop.permute.xlu1 %4767  ;;  %2532 = vmatmul.mubr.bf16.gmra.mrb[88].mxu0 %v4901_v53 }
 0x263   : > { %v4625_v15 = vunpack.i.h.bf16 %v4623_v43  ;;  %v4624_v0 = vunpack.i.l.bf16 %v4623_v43  ;;  %v4770_v18 = vunpack.i.h.bf16 %v4768_v28  ;;  %v4769_v63 = vunpack.i.l.bf16 %v4768_v28  ;;  %4221 = vmatprep.subr.msk.bf16.mxu0 %vm6069_vm8, %v3826_v45  ;;  %2539 = vmatprep.mubr.bf16.mxu0 %v4902_v59  ;;  %v4916_v28 = vld [vmem:[%s6732_s3 + $0x68] ss:$16 sps:$4 sm:$0xff]  }
 0x264   : > { %4156 = vmatpush3.bf16.msk.msra.mxu1 %vm5957_vm6, %v3637_v40 }
 0x265   : > { %v3682_v56 = vpack.c.bf16 %v4625_v15, %v4624_v0  ;;  %v3786_v24 = vpack.c.bf16 %v4770_v18, %v4769_v63  ;;  %v4951_v15 = vld [vmem:[%s6732_s3 + $0x260] ss:$16 sps:$4 sm:$0xff]   ;;  %v4917_v63 = vld [vmem:[%s6732_s3 + $0x8c] ss:$16 sps:$4 sm:$0xff]  }
 0x266   : > { %v4628_v54 = vpop.permute.xlu0 %4627  ;;  %v4778_v31 = vpop.permute.xlu1 %4777 }
 0x267   : > { %v4630_v30 = vunpack.i.h.bf16 %v4628_v54  ;;  %v4629_v51 = vunpack.i.l.bf16 %v4628_v54  ;;  %v4780_v4 = vunpack.i.h.bf16 %v4778_v31  ;;  %v4779_v5 = vunpack.i.l.bf16 %v4778_v31  ;;  %4157 = vmatprep.subr.msk.bf16.mxu1 %vm5957_vm6, %v3682_v56  ;;  %4222 = vmatpush3.bf16.msk.msra.mxu0 %vm6069_vm8, %v3786_v24  ;;  %v4953_v24 = vld [vmem:[%s6732_s3 + $0x284] ss:$16 sps:$4 sm:$0xff]  }
 0x268   : > { %4158 = vmatpush3.bf16.msk.msra.mxu1 %vm5957_vm6, %v3642_v49 }
 0x269   : > { %v3687_v23 = vpack.c.bf16 %v4630_v30, %v4629_v51  ;;  %v3831_v8 = vpack.c.bf16 %v4780_v4, %v4779_v5 }
 0x26a   : > { %v4638_v33 = vpop.permute.xlu0 %4637  ;;  %v4793_v25 = vpop.permute.xlu1 %4792  ;;  %2540 = vmatmul.mubr.bf16.gmra.mrb[92].mxu0 %v4904_v19 }
 0x26b   : > { %v4640_v20 = vunpack.i.h.bf16 %v4638_v33  ;;  %v4639_v11 = vunpack.i.l.bf16 %v4638_v33  ;;  %v4795_v7 = vunpack.i.h.bf16 %v4793_v25  ;;  %v4794_v35 = vunpack.i.l.bf16 %v4793_v25  ;;  %4159 = vmatprep.subr.msk.bf16.mxu1 %vm5957_vm6, %v3687_v23  ;;  %4223 = vmatprep.subr.msk.bf16.mxu0 %vm6069_vm8, %v3831_v8  ;;  %v4919_v33 = vld [vmem:[%s6732_s3 + $0x88] ss:$16 sps:$4 sm:$0xff]   ;;  %v4957_v25 = vld [vmem:[%s6732_s3 + $0x280] ss:$16 sps:$4 sm:$0xff]  }
 0x26c   : > { %2870 = vmatprep.mubr.bf16.mxu0 %v4931_v26 }
 0x26d   : > { %v3647_v2 = vpack.c.bf16 %v4640_v20, %v4639_v11  ;;  %v3791_v36 = vpack.c.bf16 %v4795_v7, %v4794_v35  ;;  %v4920_v7 = vld [vmem:[%s6732_s3 + $0xac] ss:$16 sps:$4 sm:$0xff]  }
 0x26e   : > { %v4648_v29 = vpop.permute.xlu0 %4647 }
 0x26f   : > { %v4650_v22 = vunpack.i.h.bf16 %v4648_v29  ;;  %v4649_v3 = vunpack.i.l.bf16 %v4648_v29  ;;  %4160 = vmatpush3.bf16.msk.msra.mxu1 %vm5957_vm6, %v3647_v2  ;;  %4224 = vmatpush3.bf16.msk.msra.mxu0 %vm6069_vm8, %v3791_v36  ;;  %v4959_v2 = vld [vmem:[%s6732_s3 + $0x2a4] ss:$16 sps:$4 sm:$0xff]  }
 0x271   : > { %v3876_v1 = vpack.c.bf16 %v4650_v22, %v4649_v3 }
 0x272   : > { %v4658_v38 = vpop.permute.xlu0 %4657  ;;  %2581 = vmatmul.mubr.bf16.vlgmr.msra.gmra.mrb[64].mxu1 %v4905_v13  ;;  %2871 = vmatmul.mubr.bf16.vlgmr.msra.gmra.mrb[96].mxu0 %v4929_v9 }
 0x273   : > { %v4660_v10 = vunpack.i.h.bf16 %v4658_v38  ;;  %v4659_v41 = vunpack.i.l.bf16 %v4658_v38  ;;  %4273 = vmatprep.subr.msk.bf16.mxu1 %vm6069_vm8, %v3876_v1  ;;  %2588 = vmatprep.mubr.bf16.mxu1 %v4908_v21 }
 0x274   : > { %2878 = vmatprep.mubr.bf16.mxu0 %v4935_v55 }
 0x275   : > { %v3836_v57 = vpack.c.bf16 %v4660_v10, %v4659_v41  ;;  %v4922_v41 = vld [vmem:[%s6732_s3 + $0xa8] ss:$16 sps:$4 sm:$0xff]  }
 0x276   : > { %v4668_v48 = vpop.permute.xlu0 %4667 }
 0x277   : > { %v4670_v52 = vunpack.i.h.bf16 %v4668_v48  ;;  %v4669_v50 = vunpack.i.l.bf16 %v4668_v48  ;;  %4274 = vmatpush3.bf16.msk.msra.mxu1 %vm6069_vm8, %v3836_v57  ;;  %v4963_v57 = vld [vmem:[%s6732_s3 + $0x2a0] ss:$16 sps:$4 sm:$0xff]  }
 0x279   : > { %v3881_v44 = vpack.c.bf16 %v4670_v52, %v4669_v50  ;;  %v4965_v50 = vld [vmem:[%s6732_s3 + $0x2c4] ss:$16 sps:$4 sm:$0xff]  }
 0x27a   : > { %v4678_v61 = vpop.permute.xlu0 %4677  ;;  %2589 = vmatmul.mubr.bf16.gmra.mrb[68].mxu1 %v4910_v46  ;;  %2879 = vmatmul.mubr.bf16.gmra.mrb[100].mxu0 %v4939_v32  ;;  %v4923_v32 = vld [vmem:[%s6732_s3 + $0xcc] ss:$16 sps:$4 sm:$0xff]  }
 0x27b   : > { %v4680_v27 = vunpack.i.h.bf16 %v4678_v61  ;;  %v4679_v39 = vunpack.i.l.bf16 %v4678_v61  ;;  %4275 = vmatprep.subr.msk.bf16.mxu1 %vm6069_vm8, %v3881_v44  ;;  %2596 = vmatprep.mubr.bf16.mxu1 %v4911_v14 }
 0x27c   : > { %2886 = vmatprep.mubr.bf16.mxu0 %v4941_v58 }
 0x27d   : > { %v3841_v12 = vpack.c.bf16 %v4680_v27, %v4679_v39 }
 0x27e   : > { %v4688_v16 = vpop.permute.xlu0 %4687 }
 0x27f   : > { %v4690_v53 = vunpack.i.h.bf16 %v4688_v16  ;;  %v4689_v34 = vunpack.i.l.bf16 %v4688_v16  ;;  %4276 = vmatpush3.bf16.msk.msra.mxu1 %vm6069_vm8, %v3841_v12 }
 0x281   : > { %v3886_v59 = vpack.c.bf16 %v4690_v53, %v4689_v34  ;;  %v4925_v34 = vld [vmem:[%s6732_s3 + $0xc8] ss:$16 sps:$4 sm:$0xff]  }
 0x282   : > { %v4698_v45 = vpop.permute.xlu0 %4697  ;;  %2597 = vmatmul.mubr.bf16.gmra.mrb[72].mxu1 %v4913_v42  ;;  %2887 = vmatmul.mubr.bf16.gmra.mrb[104].mxu0 %v4945_v37 }
 0x283   : > { %v4700_v40 = vunpack.i.h.bf16 %v4698_v45  ;;  %v4699_v6 = vunpack.i.l.bf16 %v4698_v45  ;;  %4277 = vmatprep.subr.msk.bf16.mxu1 %vm6069_vm8, %v3886_v59  ;;  %2604 = vmatprep.mubr.bf16.mxu1 %v4914_v17  ;;  %v4969_v17 = vld [vmem:[%s6732_s3 + $0x2c0] ss:$16 sps:$4 sm:$0xff]   ;;  %v4971_v59 = vld [vmem:[%s6732_s3 + $0x2e4] ss:$16 sps:$4 sm:$0xff]  }
 0x284   : > { %2894 = vmatprep.mubr.bf16.mxu0 %v4947_v47  ;;  %v4926_v47 = vld [vmem:[%s6732_s3 + $0xec] ss:$16 sps:$4 sm:$0xff]  }
 0x285   : > { %v3846_v62 = vpack.c.bf16 %v4700_v40, %v4699_v6 }
 0x286   : > { %v4708_v43 = vpop.permute.xlu0 %4707 }
 0x287   : > { %v4710_v0 = vunpack.i.h.bf16 %v4708_v43  ;;  %v4709_v18 = vunpack.i.l.bf16 %v4708_v43  ;;  %4278 = vmatpush3.bf16.msk.msra.mxu1 %vm6069_vm8, %v3846_v62 }
 0x288   : > { %v3969_v56 = vpop.f32.mrb[0].mxu1 }
 0x289   : > { %v3891_v49 = vpack.c.bf16 %v4710_v0, %v4709_v18  ;;  %v3970_v54 = vpop.f32.mrb[1].mxu1 }
 0x28a   : > { %v4718_v31 = vpop.permute.xlu0 %4717  ;;  %2605 = vmatmul.mubr.bf16.gmra.mrb[76].mxu1 %v4916_v28  ;;  %v6289_v19 = vadd.f32 %v3970_v54, %v3969_v56  ;;  %v3972_v30 = vpop.f32.mrb[2].mxu1  ;;  %2895 = vmatmul.mubr.bf16.gmra.mrb[108].mxu0 %v4951_v15 }
 0x28b   : > { %v4720_v51 = vunpack.i.h.bf16 %v4718_v31  ;;  %v4719_v4 = vunpack.i.l.bf16 %v4718_v31  ;;  %4279 = vmatprep.subr.msk.bf16.mxu1 %vm6069_vm8, %v3891_v49  ;;  %2612 = vmatprep.mubr.bf16.mxu1 %v4917_v63  ;;  %v3973_v5 = vpop.f32.mrb[3].mxu1  ;;  %v4928_v31 = vld [vmem:[%s6732_s3 + $0xe8] ss:$16 sps:$4 sm:$0xff]  }
 0x28c   : > { %v6293_v26 = vadd.f32 %v3973_v5, %v3972_v30  ;;  %2902 = vmatprep.mubr.bf16.mxu0 %v4953_v24  ;;  %v4975_v30 = vld [vmem:[%s6732_s3 + $0x2e0] ss:$16 sps:$4 sm:$0xff]   ;;  %v4934_v5 = vld [vmem:[%s6732_s3 + $0x20c] ss:$16 sps:$4 sm:$0xff]  }
 0x28d   : > { %v3851_v23 = vpack.c.bf16 %v4720_v51, %v4719_v4 }
 0x28e   : > { %v4728_v8 = vpop.permute.xlu0 %4727 }
 0x28f   : > { %v4730_v20 = vunpack.i.h.bf16 %v4728_v8  ;;  %v4729_v11 = vunpack.i.l.bf16 %v4728_v8  ;;  %4280 = vmatpush3.bf16.msk.msra.mxu1 %vm6069_vm8, %v3851_v23 }
 0x290   : > { %v3975_v35 = vpop.f32.mrb[4].mxu1 }
 0x291   : > { %v3896_v36 = vpack.c.bf16 %v4730_v20, %v4729_v11  ;;  %v3976_v29 = vpop.f32.mrb[5].mxu1 }
 0x292   : > { %v4738_v13 = vpop.permute.xlu0 %4737  ;;  %2613 = vmatmul.mubr.bf16.gmra.mrb[80].mxu1 %v4919_v33  ;;  %v6309_v9 = vadd.f32 %v3976_v29, %v3975_v35  ;;  %v3978_v22 = vpop.f32.mrb[6].mxu1  ;;  %2903 = vmatmul.mubr.bf16.gmra.mrb[112].mxu0 %v4957_v25 }
 0x293   : > { %v4740_v3 = vunpack.i.h.bf16 %v4738_v13  ;;  %v4739_v21 = vunpack.i.l.bf16 %v4738_v13  ;;  %4281 = vmatprep.subr.msk.bf16.mxu1 %vm6069_vm8, %v3896_v36  ;;  %2620 = vmatprep.mubr.bf16.mxu1 %v4920_v7  ;;  %v3979_v55 = vpop.f32.mrb[7].mxu1  ;;  %v4932_v13 = vld [vmem:[%s6732_s3 + $0x208] ss:$16 sps:$4 sm:$0xff]  }
 0x294   : > { %v6313_v1 = vadd.f32 %v3979_v55, %v3978_v22  ;;  %2910 = vmatprep.mubr.bf16.mxu0 %v4959_v2  ;;  %v4937_v22 = vld [vmem:[%s6732_s3 + $0x22c] ss:$16 sps:$4 sm:$0xff]  }
 0x295   : > { %v3856_v38 = vpack.c.bf16 %v4740_v3, %v4739_v21 }
 0x296   : > { %v4748_v10 = vpop.permute.xlu0 %4747 }
 0x297   : > { %v4750_v48 = vunpack.i.h.bf16 %v4748_v10  ;;  %v4749_v46 = vunpack.i.l.bf16 %v4748_v10  ;;  %4282 = vmatpush3.bf16.msk.msra.mxu1 %vm6069_vm8, %v3856_v38 }
 0x298   : > { %v3981_v52 = vpop.f32.mrb[8].mxu1 }
 0x299   : > { %v3901_v14 = vpack.c.bf16 %v4750_v48, %v4749_v46  ;;  %v3982_v58 = vpop.f32.mrb[9].mxu1 }
 0x29a   : > { %v4758_v44 = vpop.permute.xlu0 %4757  ;;  %2621 = vmatmul.mubr.bf16.gmra.mrb[84].mxu1 %v4922_v41  ;;  %v6329_v61 = vadd.f32 %v3982_v58, %v3981_v52  ;;  %v3984_v27 = vpop.f32.mrb[10].mxu1  ;;  %2911 = vmatmul.mubr.bf16.gmra.mrb[116].mxu0 %v4963_v57  ;;  %v4940_v57 = vld [vmem:[%s6732_s3 + $0x228] ss:$16 sps:$4 sm:$0xff]  }
 0x29b   : > { %v4760_v39 = vunpack.i.h.bf16 %v4758_v44  ;;  %v4759_v12 = vunpack.i.l.bf16 %v4758_v44  ;;  %4283 = vmatprep.subr.msk.bf16.mxu1 %vm6069_vm8, %v3901_v14  ;;  %2628 = vmatprep.mubr.bf16.mxu1 %v4923_v32  ;;  %v3985_v16 = vpop.f32.mrb[11].mxu1  ;;  %v4946_v58 = vld [vmem:[%s6732_s3 + $0x248] ss:$16 sps:$4 sm:$0xff]   ;;  %v4949_v44 = vld [vmem:[%s6732_s3 + $0x26c] ss:$16 sps:$4 sm:$0xff]  }
 0x29c   : > { %v6333_v42 = vadd.f32 %v3985_v16, %v3984_v27  ;;  %2918 = vmatprep.mubr.bf16.mxu0 %v4965_v50 }
 0x29d   : > { %v3861_v37 = vpack.c.bf16 %v4760_v39, %v4759_v12 }
 0x29e   : > { %v4773_v53 = vpop.permute.xlu0 %4772 }
 0x29f   : > { %4284 = vmatpush3.bf16.msk.msra.mxu1 %vm6069_vm8, %v3861_v37  ;;  %v4775_v6 = vunpack.i.h.bf16 %v4773_v53  ;;  %v4774_v62 = vunpack.i.l.bf16 %v4773_v53 }
 0x2a0   : > { %v3987_v45 = vpop.f32.mrb[12].mxu1 }
 0x2a1   : > { %v3988_v40 = vpop.f32.mrb[13].mxu1  ;;  %v3866_v49 = vpack.c.bf16 %v4775_v6, %v4774_v62 }
 0x2a2   : > { %v4783_v43 = vpop.permute.xlu0 %4782  ;;  %2629 = vmatmul.mubr.bf16.gmra.mrb[88].mxu1 %v4925_v34  ;;  %v6349_v28 = vadd.f32 %v3988_v40, %v3987_v45  ;;  %v3990_v15 = vpop.f32.mrb[14].mxu1  ;;  %2919 = vmatmul.mubr.bf16.gmra.mrb[120].mxu0 %v4969_v17  ;;  %v4952_v34 = vld [vmem:[%s6732_s3 + $0x268] ss:$16 sps:$4 sm:$0xff]   ;;  %v4955_v17 = vld [vmem:[%s6732_s3 + $0x28c] ss:$16 sps:$4 sm:$0xff]  }
 0x2a3   : > { %v4785_v0 = vunpack.i.h.bf16 %v4783_v43  ;;  %v4784_v18 = vunpack.i.l.bf16 %v4783_v43  ;;  %2636 = vmatprep.mubr.bf16.mxu1 %v4926_v47  ;;  %v3991_v63 = vpop.f32.mrb[15].mxu1  ;;  %2926 = vmatprep.mubr.bf16.mxu0 %v4971_v59 }
 0x2a4   : > { %v6351_v56 = vadd.f32 %v3991_v63, %v3990_v15  ;;  %v4958_v15 = vld [vmem:[%s6732_s3 + $0x288] ss:$16 sps:$4 sm:$0xff]  }
 0x2a5   : > { %v3906_v24 = vpack.c.bf16 %v4785_v0, %v4784_v18  ;;  %v4961_v18 = vld [vmem:[%s6732_s3 + $0x2ac] ss:$16 sps:$4 sm:$0xff]  }
 0x2a6   : > { %v4788_v54 = vpop.permute.xlu0 %4787 }
 0x2a7   : > { %v4790_v51 = vunpack.i.h.bf16 %v4788_v54  ;;  %v4789_v4 = vunpack.i.l.bf16 %v4788_v54  ;;  %4285 = vmatprep.subr.msk.bf16.mxu1 %vm6069_vm8, %v3906_v24 }
 0x2a8   : > { %4286 = vmatpush3.bf16.msk.msra.mxu1 %vm6069_vm8, %v3866_v49  ;;  %v3993_v23 = vpop.f32.mrb[16].mxu1 }
 0x2a9   : > { %v3911_v8 = vpack.c.bf16 %v4790_v51, %v4789_v4  ;;  %v3994_v33 = vpop.f32.mrb[17].mxu1  ;;  %v4967_v4 = vld [vmem:[%s6732_s3 + $0x2cc] ss:$16 sps:$4 sm:$0xff]  }
 0x2aa   : > { %v4798_v25 = vpop.permute.xlu0 %4797  ;;  %2637 = vmatmul.mubr.bf16.gmra.mrb[92].mxu1 %v4928_v31  ;;  %v6366_v20 = vadd.f32 %v3994_v33, %v3993_v23  ;;  %v3996_v11 = vpop.f32.mrb[18].mxu1  ;;  %2927 = vmatmul.mubr.bf16.gmra.mrb[124].mxu0 %v4975_v30 }
 0x2ab   : > { %v4800_v7 = vunpack.i.h.bf16 %v4798_v25  ;;  %v4799_v35 = vunpack.i.l.bf16 %v4798_v25  ;;  %4287 = vmatprep.subr.msk.bf16.mxu1 %vm6069_vm8, %v3911_v8  ;;  %2967 = vmatprep.mubr.bf16.mxu1 %v4934_v5  ;;  %v3997_v2 = vpop.f32.mrb[19].mxu1 }
 0x2ac   : > { %v6370_v36 = vadd.f32 %v3997_v2, %v3996_v11 }
 0x2ad   : > { %v3871_v29 = vpack.c.bf16 %v4800_v7, %v4799_v35  ;;  %v4973_v35 = vld [vmem:[%s6732_s3 + $0x2ec] ss:$16 sps:$4 sm:$0xff]  }
 0x2af   : > { %4288 = vmatpush3.bf16.msk.msra.mxu1 %vm6069_vm8, %v3871_v29 }
 0x2b0   : > { %v3999_v3 = vpop.f32.mrb[20].mxu1 }
 0x2b1   : > { %v4000_v21 = vpop.f32.mrb[21].mxu1 }
 0x2b2   : > { %2968 = vmatmul.mubr.bf16.vlgmr.msra.gmra.mrb[96].mxu1 %v4932_v13  ;;  %v6380_v55 = vadd.f32 %v4000_v21, %v3999_v3  ;;  %v4002_v38 = vpop.f32.mrb[22].mxu1 }
 0x2b3   : > { %2975 = vmatprep.mubr.bf16.mxu1 %v4937_v22  ;;  %v4003_v10 = vpop.f32.mrb[23].mxu1 }
 0x2b4   : > { %v6382_v41 = vadd.f32 %v4003_v10, %v4002_v38 }
 0x2b8   : > { %v4005_v48 = vpop.f32.mrb[24].mxu1 }
 0x2b9   : > { %v4006_v46 = vpop.f32.mrb[25].mxu1 }
 0x2ba   : > { %2976 = vmatmul.mubr.bf16.gmra.mrb[100].mxu1 %v4940_v57  ;;  %v6390_v32 = vadd.f32 %v4006_v46, %v4005_v48  ;;  %v4008_v52 = vpop.f32.mrb[26].mxu1 }
 0x2bb   : > { %2983 = vmatprep.mubr.bf16.mxu1 %v4943_v60  ;;  %v4009_v50 = vpop.f32.mrb[27].mxu1 }
 0x2bc   : > { %v6392_v14 = vadd.f32 %v4009_v50, %v4008_v52 }
 0x2c0   : > { %v4011_v27 = vpop.f32.mrb[28].mxu1 }
 0x2c1   : > { %v4012_v39 = vpop.f32.mrb[29].mxu1 }
 0x2c2   : > { %2984 = vmatmul.mubr.bf16.gmra.mrb[104].mxu1 %v4946_v58  ;;  %v6400_v12 = vadd.f32 %v4012_v39, %v4011_v27  ;;  %v4014_v16 = vpop.f32.mrb[30].mxu1 }
 0x2c3   : > { %2991 = vmatprep.mubr.bf16.mxu1 %v4949_v44  ;;  %v4015_v37 = vpop.f32.mrb[31].mxu1 }
 0x2c4   : > { %v6402_v53 = vadd.f32 %v4015_v37, %v4014_v16 }
 0x2c8   : > { %v4033_v47 = vpop.f32.mrb[32].mxu1 }
 0x2c9   : > { %v4034_v59 = vpop.f32.mrb[33].mxu1 }
 0x2ca   : > { %2992 = vmatmul.mubr.bf16.gmra.mrb[108].mxu1 %v4952_v34  ;;  %v4035_v45 = vadd.f32 %v4034_v59, %v4033_v47  ;;  %v4036_v40 = vpop.f32.mrb[34].mxu1 }
 0x2cb   : > { %2999 = vmatprep.mubr.bf16.mxu1 %v4955_v17  ;;  %v4037_v6 = vpop.f32.mrb[35].mxu1 }
 0x2cc   : > { %v6411_v62 = vadd.f32 %v4035_v45, %v6289_v19  ;;  %v4038_v43 = vadd.f32 %v4037_v6, %v4036_v40 }
 0x2ce   : > { %v6417_v0 = vadd.f32 %v4038_v43, %v6293_v26  ;;  %v4964_v26 = vld [vmem:[%s6732_s3 + $0x2a8] ss:$16 sps:$4 sm:$0xff]  }
 0x2d0   : > { %v4039_v63 = vpop.f32.mrb[36].mxu1 }
 0x2d1   : > { %v4040_v24 = vpop.f32.mrb[37].mxu1 }
 0x2d2   : > { %3000 = vmatmul.mubr.bf16.gmra.mrb[112].mxu1 %v4958_v15  ;;  %v4041_v49 = vadd.f32 %v4040_v24, %v4039_v63  ;;  %v4042_v54 = vpop.f32.mrb[38].mxu1 }
 0x2d3   : > { %3007 = vmatprep.mubr.bf16.mxu1 %v4961_v18  ;;  %v4043_v19 = vpop.f32.mrb[39].mxu1 }
 0x2d4   : > { %v6423_v31 = vadd.f32 %v4041_v49, %v6309_v9  ;;  %v4044_v30 = vadd.f32 %v4043_v19, %v4042_v54 }
 0x2d6   : > { %v6429_v51 = vadd.f32 %v4044_v30, %v6313_v1  ;;  %v4970_v1 = vld [vmem:[%s6732_s3 + $0x2c8] ss:$16 sps:$4 sm:$0xff]  }
 0x2d8   : > { %v4045_v5 = vpop.f32.mrb[40].mxu1 }
 0x2d9   : > { %v4046_v23 = vpop.f32.mrb[41].mxu1 }
 0x2da   : > { %3008 = vmatmul.mubr.bf16.gmra.mrb[116].mxu1 %v4964_v26  ;;  %v4047_v8 = vadd.f32 %v4046_v23, %v4045_v5  ;;  %v4048_v33 = vpop.f32.mrb[42].mxu1 }
 0x2db   : > { %3015 = vmatprep.mubr.bf16.mxu1 %v4967_v4  ;;  %v4049_v9 = vpop.f32.mrb[43].mxu1 }
 0x2dc   : > { %v6435_v25 = vadd.f32 %v4047_v8, %v6329_v61  ;;  %v4050_v11 = vadd.f32 %v4049_v9, %v4048_v33 }
 0x2de   : > { %v6441_v7 = vadd.f32 %v4050_v11, %v6333_v42  ;;  %v4976_v42 = vld [vmem:[%s6732_s3 + $0x2e8] ss:$16 sps:$4 sm:$0xff]  }
 0x2e0   : > { %v4051_v2 = vpop.f32.mrb[44].mxu1 }
 0x2e1   : > { %v4052_v29 = vpop.f32.mrb[45].mxu1 }
 0x2e2   : > { %3016 = vmatmul.mubr.bf16.gmra.mrb[120].mxu1 %v4970_v1  ;;  %v4053_v13 = vadd.f32 %v4052_v29, %v4051_v2  ;;  %v4054_v22 = vpop.f32.mrb[46].mxu1  ;;  %v5048_v2 = vmov 0.0  }
 0x2e3   : > { %3023 = vmatprep.mubr.bf16.mxu1 %v4973_v35  ;;  %v4055_v61 = vpop.f32.mrb[47].mxu1  ;;  %4412 = vmatprep.subr.bf16.mxu0 %v5048_v2 }
 0x2e4   : > { %v6447_v3 = vadd.f32 %v4053_v13, %v6349_v28  ;;  %v4056_v21 = vadd.f32 %v4055_v61, %v4054_v22  ;;  %4428 = vmatprep.mubr.msk.bf16.mxu0 %vm5049_vm9, %v5048_v2 }
 0x2e6   : > { %v6453_v38 = vadd.f32 %v4056_v21, %v6351_v56 }
 0x2e8   : > { %v4057_v10 = vpop.f32.mrb[48].mxu1 }
 0x2e9   : > { %v4058_v57 = vpop.f32.mrb[49].mxu1 }
 0x2ea   : > { %3024 = vmatmul.mubr.bf16.gmra.mrb[124].mxu1 %v4976_v42  ;;  %v4059_v60 = vadd.f32 %v4058_v57, %v4057_v10  ;;  %v4060_v48 = vpop.f32.mrb[50].mxu1 }
 0x2eb   : > { %v4061_v46 = vpop.f32.mrb[51].mxu1 }
 0x2ec   : > { %v6456_v52 = vadd.f32 %v4059_v60, %v6366_v20  ;;  %v4062_v50 = vadd.f32 %v4061_v46, %v4060_v48 }
 0x2ee   : > { %v6459_v28 = vadd.f32 %v4062_v50, %v6370_v36 }
 0x2f0   : > { %v4063_v58 = vpop.f32.mrb[52].mxu1 }
 0x2f1   : > { %v4064_v44 = vpop.f32.mrb[53].mxu1 }
 0x2f2   : > { %v4065_v27 = vadd.f32 %v4064_v44, %v4063_v58  ;;  %v4066_v39 = vpop.f32.mrb[54].mxu1 }
 0x2f3   : > { %v4067_v16 = vpop.f32.mrb[55].mxu1 }
 0x2f4   : > { %v6462_v56 = vadd.f32 %v4065_v27, %v6380_v55  ;;  %v4068_v37 = vadd.f32 %v4067_v16, %v4066_v39 }
 0x2f6   : > { %v6465_v34 = vadd.f32 %v4068_v37, %v6382_v41 }
 0x2f8   : > { %v4069_v17 = vpop.f32.mrb[56].mxu1 }
 0x2f9   : > { %v4070_v47 = vpop.f32.mrb[57].mxu1 }
 0x2fa   : > { %v4071_v20 = vadd.f32 %v4070_v47, %v4069_v17  ;;  %v4072_v59 = vpop.f32.mrb[58].mxu1 }
 0x2fb   : > { %v4073_v45 = vpop.f32.mrb[59].mxu1 }
 0x2fc   : > { %v6468_v36 = vadd.f32 %v4071_v20, %v6390_v32  ;;  %v4074_v40 = vadd.f32 %v4073_v45, %v4072_v59 }
 0x2fe   : > { %v6471_v6 = vadd.f32 %v4074_v40, %v6392_v14 }
 0x300   : > { %v4075_v43 = vpop.f32.mrb[60].mxu1 }
 0x301   : > { %v4076_v15 = vpop.f32.mrb[61].mxu1 }
 0x302   : > { %v4077_v55 = vadd.f32 %v4076_v15, %v4075_v43  ;;  %v4078_v18 = vpop.f32.mrb[62].mxu1 }
 0x303   : > { %v4079_v63 = vpop.f32.mrb[63].mxu1 }
 0x304   : > { %v6474_v41 = vadd.f32 %v4077_v55, %v6400_v12  ;;  %v4080_v24 = vadd.f32 %v4079_v63, %v4078_v18 }
 0x305   : > { %v4097_v49 = vpop.f32.mrb[64].mxu0 }
 0x306   : > { %v4098_v54 = vpop.f32.mrb[65].mxu0  ;;  %v6477_v19 = vadd.f32 %v4080_v24, %v6402_v53 }
 0x307   : > { %v4099_v32 = vadd.f32 %v4098_v54, %v4097_v49  ;;  %v4100_v30 = vpop.f32.mrb[66].mxu0 }
 0x308   : > { %v4101_v26 = vpop.f32.mrb[67].mxu0 }
 0x309   : > { %v6480_v14 = vadd.f32 %v4099_v32, %v6411_v62  ;;  %v4102_v4 = vadd.f32 %v4101_v26, %v4100_v30 }
 0x30b   : > { %v6483_v5 = vadd.f32 %v4102_v4, %v6417_v0 }
 0x30d   : > { %v4103_v23 = vpop.f32.mrb[68].mxu0 }
 0x30e   : > { %v4104_v8 = vpop.f32.mrb[69].mxu0 }
 0x30f   : > { %v4105_v12 = vadd.f32 %v4104_v8, %v4103_v23  ;;  %v4106_v33 = vpop.f32.mrb[70].mxu0 }
 0x310   : > { %v4107_v9 = vpop.f32.mrb[71].mxu0 }
 0x311   : > { %v6486_v11 = vadd.f32 %v4105_v12, %v6423_v31  ;;  %v4108_v53 = vadd.f32 %v4107_v9, %v4106_v33 }
 0x313   : > { %v6489_v1 = vadd.f32 %v4108_v53, %v6429_v51 }
 0x315   : > { %v4109_v35 = vpop.f32.mrb[72].mxu0 }
 0x316   : > { %v4110_v62 = vpop.f32.mrb[73].mxu0 }
 0x317   : > { %v4111_v29 = vadd.f32 %v4110_v62, %v4109_v35  ;;  %v4112_v0 = vpop.f32.mrb[74].mxu0 }
 0x318   : > { %v4113_v13 = vpop.f32.mrb[75].mxu0 }
 0x319   : > { %v6493_v22 = vadd.f32 %v4111_v29, %v6435_v25  ;;  %v4114_v61 = vadd.f32 %v4113_v13, %v4112_v0 }
 0x31b   : > { %v6496_v21 = vadd.f32 %v4114_v61, %v6441_v7 }
 0x31d   : > { %v4115_v31 = vpop.f32.mrb[76].mxu0 }
 0x31e   : > { %v4116_v42 = vpop.f32.mrb[77].mxu0 }
 0x31f   : > { %v4117_v10 = vadd.f32 %v4116_v42, %v4115_v31  ;;  %v4118_v51 = vpop.f32.mrb[78].mxu0 }
 0x320   : > { %v4119_v57 = vpop.f32.mrb[79].mxu0 }
 0x321   : > { %v6499_v60 = vadd.f32 %v4117_v10, %v6447_v3  ;;  %v4120_v48 = vadd.f32 %v4119_v57, %v4118_v51 }
 0x323   : > { %v6502_v46 = vadd.f32 %v4120_v48, %v6453_v38 }
 0x325   : > { %v4121_v50 = vpop.f32.mrb[80].mxu0 }
 0x326   : > { %v4122_v58 = vpop.f32.mrb[81].mxu0 }
 0x327   : > { %v4123_v25 = vadd.f32 %v4122_v58, %v4121_v50  ;;  %v4124_v44 = vpop.f32.mrb[82].mxu0 }
 0x328   : > { %v4125_v27 = vpop.f32.mrb[83].mxu0 }
 0x329   : > { %v6505_v7 = vadd.f32 %v4123_v25, %v6456_v52  ;;  %v4126_v39 = vadd.f32 %v4125_v27, %v4124_v44 }
 0x32b   : > { %v6508_v16 = vadd.f32 %v4126_v39, %v6459_v28 }
 0x32d   : > { %v4127_v37 = vpop.f32.mrb[84].mxu0 }
 0x32e   : > { %v4128_v17 = vpop.f32.mrb[85].mxu0 }
 0x32f   : > { %v4129_v3 = vadd.f32 %v4128_v17, %v4127_v37  ;;  %v4130_v47 = vpop.f32.mrb[86].mxu0 }
 0x330   : > { %v4131_v20 = vpop.f32.mrb[87].mxu0 }
 0x331   : > { %v6511_v38 = vadd.f32 %v4129_v3, %v6462_v56  ;;  %v4132_v59 = vadd.f32 %v4131_v20, %v4130_v47 }
 0x333   : > { %v6514_v45 = vadd.f32 %v4132_v59, %v6465_v34 }
 0x335   : > { %v4133_v40 = vpop.f32.mrb[88].mxu0 }
 0x336   : > { %v4134_v43 = vpop.f32.mrb[89].mxu0 }
 0x337   : > { %v4135_v52 = vadd.f32 %v4134_v43, %v4133_v40  ;;  %v4136_v15 = vpop.f32.mrb[90].mxu0 }
 0x338   : > { %v4137_v55 = vpop.f32.mrb[91].mxu0 }
 0x339   : > { %v6517_v28 = vadd.f32 %v4135_v52, %v6468_v36  ;;  %v4138_v18 = vadd.f32 %v4137_v55, %v4136_v15 }
 0x33b   : > { %v6520_v63 = vadd.f32 %v4138_v18, %v6471_v6 }
 0x33d   : > { %v4139_v24 = vpop.f32.mrb[92].mxu0 }
 0x33e   : > { %v4140_v49 = vpop.f32.mrb[93].mxu0 }
 0x33f   : > { %v4141_v56 = vadd.f32 %v4140_v49, %v4139_v24  ;;  %v4142_v54 = vpop.f32.mrb[94].mxu0 }
 0x340   : > { %v4143_v32 = vpop.f32.mrb[95].mxu0 }
 0x341   : > { %v6523_v34 = vadd.f32 %v4141_v56, %v6474_v41  ;;  %v4144_v30 = vadd.f32 %v4143_v32, %v4142_v54 }
 0x343   : > { %v6526_v26 = vadd.f32 %v4144_v30, %v6477_v19 }
 0x345   : > { %v4161_v4 = vpop.f32.mrb[64].mxu1  ;;  %v4225_v23 = vpop.f32.mrb[96].mxu0 }
 0x346   : > { %v4162_v36 = vpop.f32.mrb[65].mxu1  ;;  %v4226_v8 = vpop.f32.mrb[97].mxu0 }
 0x347   : > { %v4163_v12 = vadd.f32 %v4162_v36, %v4161_v4  ;;  %v4164_v33 = vpop.f32.mrb[66].mxu1  ;;  %v6528_v6 = vadd.f32 %v4226_v8, %v4225_v23  ;;  %v4228_v9 = vpop.f32.mrb[98].mxu0 }
 0x348   : > { %v4165_v53 = vpop.f32.mrb[67].mxu1  ;;  %v4229_v35 = vpop.f32.mrb[99].mxu0 }
 0x349   : > { %v6531_v62 = vadd.f32 %v4163_v12, %v6480_v14  ;;  %v4166_v41 = vadd.f32 %v4165_v53, %v4164_v33  ;;  %v6533_v29 = vadd.f32 %v4229_v35, %v4228_v9 }
 0x34b   : > { %v6536_v19 = vadd.f32 %v4166_v41, %v6483_v5 }
 0x34d   : > { %v4167_v0 = vpop.f32.mrb[68].mxu1  ;;  %v4231_v13 = vpop.f32.mrb[100].mxu0 }
 0x34e   : > { %v4168_v61 = vpop.f32.mrb[69].mxu1  ;;  %v4232_v31 = vpop.f32.mrb[101].mxu0 }
 0x34f   : > { %v4169_v42 = vadd.f32 %v4168_v61, %v4167_v0  ;;  %v4170_v10 = vpop.f32.mrb[70].mxu1  ;;  %v6539_v51 = vadd.f32 %v4232_v31, %v4231_v13  ;;  %v4234_v57 = vpop.f32.mrb[102].mxu0 }
 0x350   : > { %v4171_v14 = vpop.f32.mrb[71].mxu1  ;;  %v4235_v48 = vpop.f32.mrb[103].mxu0 }
 0x351   : > { %v6542_v50 = vadd.f32 %v4169_v42, %v6486_v11  ;;  %v4172_v58 = vadd.f32 %v4171_v14, %v4170_v10  ;;  %v6544_v5 = vadd.f32 %v4235_v48, %v4234_v57 }
 0x353   : > { %v6547_v25 = vadd.f32 %v4172_v58, %v6489_v1 }
 0x355   : > { %v4173_v44 = vpop.f32.mrb[72].mxu1  ;;  %v4237_v27 = vpop.f32.mrb[104].mxu0 }
 0x356   : > { %v4174_v39 = vpop.f32.mrb[73].mxu1  ;;  %v4238_v37 = vpop.f32.mrb[105].mxu0 }
 0x357   : > { %v4175_v17 = vadd.f32 %v4174_v39, %v4173_v44  ;;  %v4176_v3 = vpop.f32.mrb[74].mxu1  ;;  %v6549_v47 = vadd.f32 %v4238_v37, %v4237_v27  ;;  %v4240_v20 = vpop.f32.mrb[106].mxu0 }
 0x358   : > { %v4177_v59 = vpop.f32.mrb[75].mxu1  ;;  %v4241_v40 = vpop.f32.mrb[107].mxu0 }
 0x359   : > { %v6552_v11 = vadd.f32 %v4175_v17, %v6493_v22  ;;  %v4178_v43 = vadd.f32 %v4177_v59, %v4176_v3  ;;  %v6554_v52 = vadd.f32 %v4241_v40, %v4240_v20 }
 0x35b   : > { %v6557_v1 = vadd.f32 %v4178_v43, %v6496_v21 }
 0x35d   : > { %v4179_v15 = vpop.f32.mrb[76].mxu1  ;;  %v4243_v55 = vpop.f32.mrb[108].mxu0 }
 0x35e   : > { %v4180_v18 = vpop.f32.mrb[77].mxu1  ;;  %v4244_v24 = vpop.f32.mrb[109].mxu0 }
 0x35f   : > { %v4181_v49 = vadd.f32 %v4180_v18, %v4179_v15  ;;  %v4182_v56 = vpop.f32.mrb[78].mxu1  ;;  %v6559_v54 = vadd.f32 %v4244_v24, %v4243_v55  ;;  %v4246_v32 = vpop.f32.mrb[110].mxu0 }
 0x360   : > { %v4183_v30 = vpop.f32.mrb[79].mxu1  ;;  %v4247_v4 = vpop.f32.mrb[111].mxu0 }
 0x361   : > { %v6562_v22 = vadd.f32 %v4181_v49, %v6499_v60  ;;  %v4184_v23 = vadd.f32 %v4183_v30, %v4182_v56  ;;  %v6564_v36 = vadd.f32 %v4247_v4, %v4246_v32 }
 0x363   : > { %v6567_v21 = vadd.f32 %v4184_v23, %v6502_v46 }
 0x365   : > { %v4185_v8 = vpop.f32.mrb[80].mxu1  ;;  %v4249_v12 = vpop.f32.mrb[112].mxu0 }
 0x366   : > { %v4186_v33 = vpop.f32.mrb[81].mxu1  ;;  %v4250_v9 = vpop.f32.mrb[113].mxu0 }
 0x367   : > { %v4187_v53 = vadd.f32 %v4186_v33, %v4185_v8  ;;  %v4188_v35 = vpop.f32.mrb[82].mxu1  ;;  %v6569_v41 = vadd.f32 %v4250_v9, %v4249_v12  ;;  %v4252_v0 = vpop.f32.mrb[114].mxu0 }
 0x368   : > { %v4189_v13 = vpop.f32.mrb[83].mxu1  ;;  %v4253_v61 = vpop.f32.mrb[115].mxu0 }
 0x369   : > { %v6572_v60 = vadd.f32 %v4187_v53, %v6505_v7  ;;  %v4190_v31 = vadd.f32 %v4189_v13, %v4188_v35  ;;  %v6574_v42 = vadd.f32 %v4253_v61, %v4252_v0 }
 0x36b   : > { %v6577_v46 = vadd.f32 %v4190_v31, %v6508_v16 }
 0x36d   : > { %v4191_v10 = vpop.f32.mrb[84].mxu1  ;;  %v4255_v57 = vpop.f32.mrb[116].mxu0 }
 0x36e   : > { %v4192_v14 = vpop.f32.mrb[85].mxu1  ;;  %v4256_v48 = vpop.f32.mrb[117].mxu0 }
 0x36f   : > { %v4193_v58 = vadd.f32 %v4192_v14, %v4191_v10  ;;  %v4194_v44 = vpop.f32.mrb[86].mxu1  ;;  %v6579_v27 = vadd.f32 %v4256_v48, %v4255_v57  ;;  %v4258_v39 = vpop.f32.mrb[118].mxu0 }
 0x370   : > { %v4195_v37 = vpop.f32.mrb[87].mxu1  ;;  %v4259_v17 = vpop.f32.mrb[119].mxu0 }
 0x371   : > { %v6582_v7 = vadd.f32 %v4193_v58, %v6511_v38  ;;  %v4196_v3 = vadd.f32 %v4195_v37, %v4194_v44  ;;  %v6584_v20 = vadd.f32 %v4259_v17, %v4258_v39 }
 0x373   : > { %v6587_v16 = vadd.f32 %v4196_v3, %v6514_v45  ;;  %v3067_v3 = vpop.permute.xlu1 %3066 }
 0x375   : > { %v4197_v59 = vpop.f32.mrb[88].mxu1  ;;  %v4261_v40 = vpop.f32.mrb[120].mxu0 }
 0x376   : > { %v4198_v43 = vpop.f32.mrb[89].mxu1  ;;  %v4262_v15 = vpop.f32.mrb[121].mxu0 }
 0x377   : > { %v4199_v55 = vadd.f32 %v4198_v43, %v4197_v59  ;;  %v4200_v18 = vpop.f32.mrb[90].mxu1  ;;  %v6589_v24 = vadd.f32 %v4262_v15, %v4261_v40  ;;  %v4264_v49 = vpop.f32.mrb[122].mxu0 }
 0x378   : > { %v4201_v56 = vpop.f32.mrb[91].mxu1  ;;  %v4265_v32 = vpop.f32.mrb[123].mxu0 }
 0x379   : > { %v6592_v38 = vadd.f32 %v4199_v55, %v6517_v28  ;;  %v4202_v30 = vadd.f32 %v4201_v56, %v4200_v18  ;;  %v6594_v4 = vadd.f32 %v4265_v32, %v4264_v49  ;;  %v3072_v43 = vpop.permute.xlu0 %3071 }
 0x37b   : > { %v6597_v45 = vadd.f32 %v4202_v30, %v6520_v63 }
 0x37d   : > { %v4203_v23 = vpop.f32.mrb[92].mxu1  ;;  %v4267_v8 = vpop.f32.mrb[124].mxu0 }
 0x37e   : > { %v4204_v12 = vpop.f32.mrb[93].mxu1  ;;  %v4268_v33 = vpop.f32.mrb[125].mxu0 }
 0x37f   : > { %v4205_v9 = vadd.f32 %v4204_v12, %v4203_v23  ;;  %v4206_v53 = vpop.f32.mrb[94].mxu1  ;;  %v6599_v35 = vadd.f32 %v4268_v33, %v4267_v8  ;;  %v4270_v0 = vpop.f32.mrb[126].mxu0 }
 0x380   : > { %v4207_v13 = vpop.f32.mrb[95].mxu1  ;;  %v4271_v28 = vpop.f32.mrb[127].mxu0 }
 0x381   : > { %v6602_v61 = vadd.f32 %v4205_v9, %v6523_v34  ;;  %v4208_v31 = vadd.f32 %v4207_v13, %v4206_v53  ;;  %v6604_v10 = vadd.f32 %v4271_v28, %v4270_v0  ;;  %v3077_v8 = vpop.permute.xlu1 %3076  ;;  %v3082_v53 = vpop.permute.xlu0 %3081 }
 0x383   : > { %v6607_v63 = vadd.f32 %v4208_v31, %v6526_v26 }
 0x385   : > { %v4289_v57 = vpop.f32.mrb[96].mxu1 }
 0x386   : > { %v4290_v14 = vpop.f32.mrb[97].mxu1 }
 0x387   : > { %v4291_v48 = vadd.f32 %v4290_v14, %v4289_v57  ;;  %v4292_v58 = vpop.f32.mrb[98].mxu1 }
 0x388   : > { %v4293_v44 = vpop.f32.mrb[99].mxu1 }
 0x389   : > { %v2970_v39 = vadd.f32 %v4291_v48, %v6528_v6  ;;  %v4294_v37 = vadd.f32 %v4293_v44, %v4292_v58  ;;  %v3087_v44 = vpop.permute.xlu1 %3086 }
 0x38b   : > { %v3032_v34 = vadd.f32 %v2970_v39, %v6531_v62  ;;  %v2973_v17 = vadd.f32 %v4294_v37, %v6533_v29 }
 0x38d   : > { %v3144_v59 = vadd.f32 %v3067_v3, %v3032_v34  ;;  %v3033_v26 = vadd.f32 %v2973_v17, %v6536_v19  ;;  %v4295_v40 = vpop.f32.mrb[100].mxu1  ;;  %v3092_v17 = vpop.permute.xlu0 %3091 }
 0x38e   : > { %v4296_v15 = vpop.f32.mrb[101].mxu1 }
 0x38f   : > { %v3160_v55 = vmax.f32 %v3144_v59, 0.0  ;;  %v3145_v18 = vadd.f32 %v3072_v43, %v3033_v26  ;;  %v4297_v49 = vadd.f32 %v4296_v15, %v4295_v40  ;;  %v4298_v56 = vpop.f32.mrb[102].mxu1 }
 0x390   : > { %v4299_v32 = vpop.f32.mrb[103].mxu1 }
 0x391   : > { %3176 = vst [vmem:[%s6616_s10] sm:$0xff] %v3160_v55  ;;  %v3161_v6 = vmax.f32 %v3145_v18, 0.0  ;;  %v2978_v62 = vadd.f32 %v4297_v49, %v6539_v51  ;;  %v4300_v29 = vadd.f32 %v4299_v32, %v4298_v56  ;;  %v3097_v49 = vpop.permute.xlu1 %3096 }
 0x393   : > { %3177 = vst [vmem:[%s6616_s10 + $0x8] sm:$0xff] %v3161_v6  ;;  %v3034_v19 = vadd.f32 %v2978_v62, %v6542_v50  ;;  %v2981_v30 = vadd.f32 %v4300_v29, %v6544_v5  ;;  %v3193_v23 = vpack.c.bf16 %v3161_v6, %v3160_v55  ;;  %v3102_v62 = vpop.permute.xlu0 %3101 }
 0x395   : > { %v3146_v12 = vadd.f32 %v3077_v8, %v3034_v19  ;;  %v3035_v33 = vadd.f32 %v2981_v30, %v6547_v25  ;;  %v4301_v9 = vpop.f32.mrb[104].mxu1  ;;  %4413 = vmatpush3.bf16.msra.mxu0 %v3193_v23 }
 0x396   : > { %v4302_v0 = vpop.f32.mrb[105].mxu1  ;;  %4414 = vmatprep.subr.bf16.mxu0 %v5048_v2 }
 0x397   : > { %v3162_v51 = vmax.f32 %v3146_v12, 0.0  ;;  %v3147_v13 = vadd.f32 %v3082_v53, %v3035_v33  ;;  %v4303_v28 = vadd.f32 %v4302_v0, %v4301_v9  ;;  %v4304_v31 = vpop.f32.mrb[106].mxu1  ;;  %v3107_v53 = vpop.permute.xlu1 %3106 }
 0x398   : > { %v4305_v50 = vpop.f32.mrb[107].mxu1 }
 0x399   : > { %3178 = vst [vmem:[%s6616_s10 + $0x10] sm:$0xff] %v3162_v51  ;;  %v3163_v57 = vmax.f32 %v3147_v13, 0.0  ;;  %v2986_v5 = vadd.f32 %v4303_v28, %v6549_v47  ;;  %v4306_v14 = vadd.f32 %v4305_v50, %v4304_v31  ;;  %v3112_v28 = vpop.permute.xlu0 %3111 }
 0x39b   : > { %3179 = vst [vmem:[%s6616_s10 + $0x18] sm:$0xff] %v3163_v57  ;;  %v3036_v48 = vadd.f32 %v2986_v5, %v6552_v11  ;;  %v2989_v25 = vadd.f32 %v4306_v14, %v6554_v52  ;;  %v3194_v58 = vpack.c.bf16 %v3163_v57, %v3162_v51 }
 0x39d   : > { %v3148_v39 = vadd.f32 %v3087_v44, %v3036_v48  ;;  %v3037_v37 = vadd.f32 %v2989_v25, %v6557_v1  ;;  %v4307_v34 = vpop.f32.mrb[108].mxu1  ;;  %4415 = vmatpush3.bf16.msra.mxu0 %v3194_v58  ;;  %v3117_v44 = vpop.permute.xlu1 %3116 }
 0x39e   : > { %v4308_v3 = vpop.f32.mrb[109].mxu1  ;;  %4416 = vmatprep.subr.bf16.mxu0 %v5048_v2 }
 0x39f   : > { %v3164_v47 = vmax.f32 %v3148_v39, 0.0  ;;  %v3149_v59 = vadd.f32 %v3092_v17, %v3037_v37  ;;  %v4309_v26 = vadd.f32 %v4308_v3, %v4307_v34  ;;  %v4310_v40 = vpop.f32.mrb[110].mxu1  ;;  %v3122_v17 = vpop.permute.xlu0 %3121 }
 0x3a0   : > { %v4311_v11 = vpop.f32.mrb[111].mxu1 }
 0x3a1   : > { %3180 = vst [vmem:[%s6616_s10 + $0x20] sm:$0xff] %v3164_v47  ;;  %v3165_v43 = vmax.f32 %v3149_v59, 0.0  ;;  %v2994_v52 = vadd.f32 %v4309_v26, %v6559_v54  ;;  %v4312_v15 = vadd.f32 %v4311_v11, %v4310_v40 }
 0x3a3   : > { %3181 = vst [vmem:[%s6616_s10 + $0x28] sm:$0xff] %v3165_v43  ;;  %v3038_v55 = vadd.f32 %v2994_v52, %v6562_v22  ;;  %v2997_v1 = vadd.f32 %v4312_v15, %v6564_v36  ;;  %v3195_v18 = vpack.c.bf16 %v3165_v43, %v3164_v47  ;;  %v3127_v15 = vpop.permute.xlu1 %3126 }
 0x3a5   : > { %v3150_v56 = vadd.f32 %v3097_v49, %v3038_v55  ;;  %v3039_v32 = vadd.f32 %v2997_v1, %v6567_v21  ;;  %v4313_v6 = vpop.f32.mrb[112].mxu1  ;;  %4417 = vmatpush3.bf16.msra.mxu0 %v3195_v18  ;;  %v3132_v49 = vpop.permute.xlu0 %3131 }
 0x3a6   : > { %v4314_v29 = vpop.f32.mrb[113].mxu1  ;;  %4418 = vmatprep.subr.bf16.mxu0 %v5048_v2 }
 0x3a7   : > { %v3166_v54 = vmax.f32 %v3150_v56, 0.0  ;;  %v3151_v19 = vadd.f32 %v3102_v62, %v3039_v32  ;;  %v4315_v30 = vadd.f32 %v4314_v29, %v4313_v6  ;;  %v4316_v23 = vpop.f32.mrb[114].mxu1 }
 0x3a8   : > { %v4317_v22 = vpop.f32.mrb[115].mxu1 }
 0x3a9   : > { %3182 = vst [vmem:[%s6616_s10 + $0x30] sm:$0xff] %v3166_v54  ;;  %v3167_v8 = vmax.f32 %v3151_v19, 0.0  ;;  %v3002_v36 = vadd.f32 %v4315_v30, %v6569_v41  ;;  %v4318_v12 = vadd.f32 %v4317_v22, %v4316_v23  ;;  %v3137_v23 = vpop.permute.xlu1 %3136 }
 0x3ab   : > { %3183 = vst [vmem:[%s6616_s10 + $0x38] sm:$0xff] %v3167_v8  ;;  %v3040_v33 = vadd.f32 %v3002_v36, %v6572_v60  ;;  %v3005_v21 = vadd.f32 %v4318_v12, %v6574_v42  ;;  %v3196_v9 = vpack.c.bf16 %v3167_v8, %v3166_v54  ;;  %v3142_v36 = vpop.permute.xlu0 %3141 }
 0x3ad   : > { %v3152_v0 = vadd.f32 %v3107_v53, %v3040_v33  ;;  %v3041_v51 = vadd.f32 %v3005_v21, %v6577_v46  ;;  %v4319_v13 = vpop.f32.mrb[116].mxu1  ;;  %4419 = vmatpush3.bf16.msra.mxu0 %v3196_v9 }
 0x3ae   : > { %v4320_v31 = vpop.f32.mrb[117].mxu1  ;;  %4420 = vmatprep.subr.bf16.mxu0 %v5048_v2 }
 0x3af   : > { %v3168_v41 = vmax.f32 %v3152_v0, 0.0  ;;  %v3153_v50 = vadd.f32 %v3112_v28, %v3041_v51  ;;  %v4321_v57 = vadd.f32 %v4320_v31, %v4319_v13  ;;  %v4322_v5 = vpop.f32.mrb[118].mxu1 }
 0x3b0   : > { %v4323_v60 = vpop.f32.mrb[119].mxu1 }
 0x3b1   : > { %3184 = vst [vmem:[%s6616_s10 + $0x40] sm:$0xff] %v3168_v41  ;;  %v3169_v14 = vmax.f32 %v3153_v50, 0.0  ;;  %v3010_v42 = vadd.f32 %v4321_v57, %v6579_v27  ;;  %v4324_v48 = vadd.f32 %v4323_v60, %v4322_v5 }
 0x3b3   : > { %3185 = vst [vmem:[%s6616_s10 + $0x48] sm:$0xff] %v3169_v14  ;;  %v3042_v25 = vadd.f32 %v3010_v42, %v6582_v7  ;;  %v3013_v46 = vadd.f32 %v4324_v48, %v6584_v20  ;;  %v3197_v58 = vpack.c.bf16 %v3169_v14, %v3168_v41 }
 0x3b5   : > { %v3154_v39 = vadd.f32 %v3117_v44, %v3042_v25  ;;  %v3043_v37 = vadd.f32 %v3013_v46, %v6587_v16  ;;  %v4325_v34 = vpop.f32.mrb[120].mxu1  ;;  %4421 = vmatpush3.bf16.msra.mxu0 %v3197_v58 }
 0x3b6   : > { %v4326_v3 = vpop.f32.mrb[121].mxu1  ;;  %4422 = vmatprep.subr.bf16.mxu0 %v5048_v2 }
 0x3b7   : > { %v3170_v27 = vmax.f32 %v3154_v39, 0.0  ;;  %v3155_v47 = vadd.f32 %v3122_v17, %v3043_v37  ;;  %v4327_v59 = vadd.f32 %v4326_v3, %v4325_v34  ;;  %v4328_v26 = vpop.f32.mrb[122].mxu1 }
 0x3b8   : > { %v4329_v7 = vpop.f32.mrb[123].mxu1 }
 0x3b9   : > { %3186 = vst [vmem:[%s6616_s10 + $0x50] sm:$0xff] %v3170_v27  ;;  %v3171_v40 = vmax.f32 %v3155_v47, 0.0  ;;  %v3018_v20 = vadd.f32 %v4327_v59, %v6589_v24  ;;  %v4330_v11 = vadd.f32 %v4329_v7, %v4328_v26 }
 0x3bb   : > { %3187 = vst [vmem:[%s6616_s10 + $0x58] sm:$0xff] %v3171_v40  ;;  %v3044_v43 = vadd.f32 %v3018_v20, %v6592_v38  ;;  %v3021_v16 = vadd.f32 %v4330_v11, %v6594_v4  ;;  %v3198_v52 = vpack.c.bf16 %v3171_v40, %v3170_v27 }
 0x3bd   : > { %v3156_v55 = vadd.f32 %v3127_v15, %v3044_v43  ;;  %v3045_v1 = vadd.f32 %v3021_v16, %v6597_v45  ;;  %v4331_v18 = vpop.f32.mrb[124].mxu1  ;;  %4423 = vmatpush3.bf16.msra.mxu0 %v3198_v52 }
 0x3be   : > { %v4332_v56 = vpop.f32.mrb[125].mxu1  ;;  %4424 = vmatprep.subr.bf16.mxu0 %v5048_v2 }
 0x3bf   : > { %v3172_v24 = vmax.f32 %v3156_v55, 0.0  ;;  %v3157_v32 = vadd.f32 %v3132_v49, %v3045_v1  ;;  %v4333_v6 = vadd.f32 %v4332_v56, %v4331_v18  ;;  %v4334_v62 = vpop.f32.mrb[126].mxu1 }
 0x3c0   : > { %v4335_v38 = vpop.f32.mrb[127].mxu1 }
 0x3c1   : > { %3188 = vst [vmem:[%s6616_s10 + $0x60] sm:$0xff] %v3172_v24  ;;  %v3173_v4 = vmax.f32 %v3157_v32, 0.0  ;;  %v3026_v29 = vadd.f32 %v4333_v6, %v6599_v35  ;;  %v4336_v54 = vadd.f32 %v4335_v38, %v4334_v62 }
 0x3c3   : > { %3189 = vst [vmem:[%s6616_s10 + $0x68] sm:$0xff] %v3173_v4  ;;  %v3046_v45 = vadd.f32 %v3026_v29, %v6602_v61  ;;  %v3029_v19 = vadd.f32 %v4336_v54, %v6604_v10  ;;  %v3199_v30 = vpack.c.bf16 %v3173_v4, %v3172_v24  ;;  %v3192_v10 = vld [vmem:[%s6734_s5] sm:$0x3] }
 0x3c5   : > { %v3158_v22 = vadd.f32 %v3137_v23, %v3046_v45  ;;  %v3047_v8 = vadd.f32 %v3029_v19, %v6607_v63  ;;  %4425 = vmatpush3.bf16.msra.mxu0 %v3199_v30 }
 0x3c6   : > { %4426 = vmatprep.subr.bf16.mxu0 %v5048_v2 }
 0x3c7   : > { %v3174_v35 = vmax.f32 %v3158_v22, 0.0  ;;  %v3159_v12 = vadd.f32 %v3142_v36, %v3047_v8 }
 0x3c9   : > { %3190 = vst [vmem:[%s6616_s10 + $0x70] sm:$0xff] %v3174_v35  ;;  %v3175_v33 = vmax.f32 %v3159_v12, 0.0 }
 0x3cb   : > { %3191 = vst [vmem:[%s6616_s10 + $0x78] sm:$0xff] %v3175_v33  ;;  %v3200_v61 = vpack.c.bf16 %v3175_v33, %v3174_v35  ;;  %s4987_s10 = scalar_lea.vmem %s4986_s25, 4096 }
 0x3cc   : > { %p4989_p1 = scmp.lt.s32.totalorder %s4987_s10, %s4981_s22 }
 0x3cd   : > { %4427 = vmatpush3.bf16.msra.mxu0 %v3200_v61 }
 0x3ce   : > { %p4990_p2 = por %p4989_p1, %p4988_p0 }
 0x3d0   : > { %4429 = vmatmul.mubr.bf16.vlgmr.msra.gmra.mrb[128].mxu0 %v3192_v10  ;;  %p4991_p3 = pnand %p4990_p2, %p4984_p13 }
 0x3d2   : > { %4994 = shalt.err (!%p4991_p3)
}
 0x3d3   : > { %s4995_s24 = scalar_lea.hbm %s6677_s21, 2048  ;;  %s4999_s17 = scalar_lea.hbm %s6736_s7, 4096 }
 0x3d4   : > { %p4996_p4 = scmp.ne.s32.totalorder %s6677_s21, %s4995_s24  ;;  %p5000_p9 = scmp.lt.u32.totalorder %s6677_s21, %s6736_s7 }
 0x3d5   : > { %p5001_p10 = scmp.lt.u32.totalorder %s4999_s17, %s4995_s24  ;;  %p5003_p12 = scmp.lt.u32.totalorder %s4995_s24, %s6677_s21 }
 0x3d6   : > { %p4997_p7 = pnand %p4996_p4, %p5136_p5 }
 0x3d7   : > { %p5002_p11 = por %p5001_p10, %p5000_p9 }
 0x3d8   : > { %p4998_p8 = pneg %p4997_p7 }
 0x3d9   : > { %p5004_p13 = por %p5003_p12, %p5002_p11 }
 0x3db   : > { %p5005_p0 = pnand %p5004_p13, %p4998_p8 }
 0x3dd   : > { %5008 = shalt.err (!%p5005_p0)
}
 0x3de   : > { %s5051_s22 = smov 128   ;;  %s5052_s9 = smov 8   ;;  %v3205_v2 = vpop.permute.xlu1 %3204 }
 0x3df   : > { %4433 = dma.vmem_to_hbm [thread:$0]  (%p5136_p5), %s6679_s18, 2048, %s6677_s21, %s6683_s23, %s5051_s22, %s5051_s22, %s5052_s9  }
 0x3e0   : > { %s6745_s25 = sshll.u32 %s5151_s19, 2 }
 0x3e1   : > { %s311_s12 = scalar_lea.vmem %s6737_s8, %s6745_s25 }
 0x4a3   : > { %v3241_v63 = vpop.f32.mrb[128].mxu0 }
 0x4a4   : > { %v3242_v21 = vadd.f32 %v3241_v63, %v3205_v2  ;;  %v4430_v9 = vpop.f32.mrb[129].mxu0 }
 0x4a5   : > { %v3244_v53 = vpop.f32.mrb[130].mxu0 }
 0x4a6   : > { %v3913_v0 = vmul.f32 -0.01, %v3242_v21  ;;  %v4431_v51 = vpop.f32.mrb[131].mxu0 }
 0x4a8   : > { %v3249_v13 = vmul.f32 1.442695, %v3913_v0 }
 0x4aa   : > { %4977 = vpow2.f32 %v3249_v13 }
 0x4b4   : > { %v4978_v28 = vpop.eup %4977 }
 0x4b5   : > { %v3251_v31 = vadd.f32 1.0, %v4978_v28 }
 0x4b7   : > { %4979 = vrcp.f32 %v3251_v31 }
 0x4c1   : > { %v4980_v41 = vpop.eup %4979 }
 0x4c2   : > { %3254 = vst [vmem:[%s311_s12] sm:$0x7] %v4980_v41 }
 0x4c3 PF: > { %p4439_p5 = scmp.ge.s32.totalorder %s5043_s30, 2  ;;  %s3291_s15 = sand.u32 1, %s5031_s27  }
 0x4c4   : > { %s3292_s18 = scalar_lea.sflag [#allocation3], %s3291_s15 }
 0x4c5   : > { %p4436_p1 = pnand %p4439_p5, %p5140_p6 }
 0x4c7   : > { %5026 = dma.done.wait (!%p4436_p1), %s3292_s18, 2048  }
 0x4c8   : > { %5028 = vsyncadd (!%p4436_p1), %s3292_s18, 4294965248  ;;  %p19_p2 = scmp.ge.s32.totalorder %s5123_s11, 4   ;;  %s6746_s27 = smov %s5035_s28 }
 0x4c9   : > { %s6747_s28 = smov %s5039_s29  ;;  %s6748_s29 = smov %s5134_s14 }
 0x4ca   : > { %s6749_s30 = smov %s5123_s11  ;;  %21 = sbr.rel (!%p19_p2) target bundleno = 3 (0x3), region = 97 }
 0x4d1   :  { %3304 = vsyncpa [#allocation3], 1 }
 0x4d2   :  { %3306 = vsyncpa [#allocation3 + $0x1], 1 }

</bundles_post_ra>
